<compile_context>
chip_gen: v5e
topology: v5e:2x2
jax: 0.10.0
libtpu: 0.0.40
codegen_flags: <defaults>
</compile_context>

<pallas_src>
import functools

import jax
import jax.numpy as jnp
from jax import lax
from jax.experimental import pallas as pl
from jax.experimental.pallas import tpu as pltpu


# --------------------------------------------------------------------------
# Kernel
# --------------------------------------------------------------------------
def _convlstm_kernel(xcol_ref, w_ref, b_ref, c_ref, h_out_ref, c_out_ref,
                     *, hidden_dim):
    """One grid step == one pixel tile (batch already folded into pixels).

    xcol_ref : (K_pad, TN)       im2col patches (bf16), features on sublanes
    w_ref    : (4*hd, K_pad)     conv weights (bf16)
    b_ref    : (4*hd, 1)         conv bias (f32)
    c_ref    : (hd, TN)          c_cur (f32)
    h_out_ref: (hd, TN)          h_next (x.dtype)
    c_out_ref: (hd, TN)          c_next (f32)
    """
    hd = hidden_dim

    # Single im2col GEMM on the MXU: (4*hd, K) x (K, TN) -> (4*hd, TN), f32 acc.
    gates = jnp.dot(w_ref[...], xcol_ref[...],
                    preferred_element_type=jnp.float32)
    gates = gates + b_ref[...]          # lane-broadcast of per-channel bias

    # sigmoid(x) = 0.5 * tanh(0.5*x) + 0.5 : one EUP op per gate (VPU mul/add
    # filler is free); exact to fp rounding.
    def _sigmoid(v):
        return 0.5 * jnp.tanh(0.5 * v) + 0.5

    # torch.split order along output channels: [i, f, o, g].
    # hd is a multiple of 8 -> each slice is sublane-aligned and lane-dense.
    i_g = _sigmoid(gates[0 * hd:1 * hd])
    f_g = _sigmoid(gates[1 * hd:2 * hd])
    o_g = _sigmoid(gates[2 * hd:3 * hd])
    g_g = jnp.tanh(gates[3 * hd:4 * hd])

    c_cur = c_ref[...]                                  # (hd, TN) f32
    c_next = f_g * c_cur + i_g * g_g
    h_next = o_g * jnp.tanh(c_next)

    # Unmasked lane-dense stores.
    h_out_ref[...] = h_next.astype(h_out_ref.dtype)
    c_out_ref[...] = c_next


# --------------------------------------------------------------------------
# Tiling / sizing helpers
# --------------------------------------------------------------------------
def _round_up(x, m):
    return -(-x // m) * m


def _pick_pixel_tile(n_pix, max_tile=1024, min_tiles=2):
    """Pixel tile over the folded B*H*W axis.

    Multiples of 256 (MXU-friendly on v6e/v7x, fine on v5e), capped at
    max_tile, aiming for >= min_tiles grid steps (megacore / both v7x TCs)
    and bounded zero-padding waste.  The caller pads the pixel axis up to a
    whole number of tiles, so no un-tiled fallback ever fires.
    """
    if n_pix <= 128:
        return 128
    if n_pix <= 512:
        # small problems: multiples of 128, try to give every core a tile
        return 128 * max(1, (_round_up(n_pix, 128) // 128) // min_tiles)
    tn = min(max_tile, 256 * max(1, (n_pix // min_tiles) // 256))
    # shrink while zero-padding waste would exceed ~12.5%
    while tn > 256 and (_round_up(n_pix, tn) - n_pix) * 8 > n_pix:
        tn -= 256
    return tn


def _vmem_limit_bytes(k_pad, tn, hd4, hd_pad, h_out_bytes):
    """Scoped-VMEM limit from the actual (double-buffered) tile footprint."""
    per_step = (k_pad * tn * 2          # xcol tile (bf16)
                + hd4 * k_pad * 2       # weights (bf16)
                + hd4 * 4               # bias
                + hd_pad * tn * 4       # c_cur tile (f32)
                + hd_pad * tn * h_out_bytes   # h_next tile
                + hd_pad * tn * 4)      # c_next tile (f32)
    gates = hd4 * tn * 4                # in-kernel f32 gate intermediate
    est = 2 * per_step + 6 * gates      # double-buffer + elementwise slack
    return int(min(64 * 1024 * 1024, max(32 * 1024 * 1024, est)))


# --------------------------------------------------------------------------
# Wrapper
# --------------------------------------------------------------------------
def convlstm_cell_forward(x, h_cur, c_cur, weight, bias, kernel_size):
    """Pallas implementation of ConvLSTM_Cell.forward.

    Args (PyTorch conventions):
      x      : (B, Cin, H, W)                    NCHW
      h_cur  : (B, hidden, H, W)                 NCHW
      c_cur  : (B, hidden, H, W)                 NCHW
      weight : (4*hidden, Cin+hidden, KH, KW)    nn.Conv2d weight
      bias   : (4*hidden,)                       nn.Conv2d bias
    Returns:
      h_next (B, hidden, H, W) in x.dtype,
      c_next (B, hidden, H, W) in float32 (recurrent state kept full precision).
    """
    kh, kw = kernel_size
    ph, pw = kh // 2, kw // 2
    b, cin, height, width = x.shape
    hd = h_cur.shape[1]
    c_tot = cin + hd                     # input-channel side (no padding needed)
    hd_pad = _round_up(hd, 8)            # output-channel / state side alignment
    hd4 = 4 * hd_pad

    # ---- output-side hidden padding (per gate) so gate slices stay aligned --
    if hd_pad != hd:
        weight = jnp.pad(
            weight.reshape(4, hd, c_tot, kh, kw),
            ((0, 0), (0, hd_pad - hd), (0, 0), (0, 0), (0, 0)),
        ).reshape(hd4, c_tot, kh, kw)
        bias = jnp.pad(bias.reshape(4, hd),
                       ((0, 0), (0, hd_pad - hd))).reshape(hd4)
        c_cur_p = jnp.pad(c_cur, ((0, 0), (0, hd_pad - hd), (0, 0), (0, 0)))
    else:
        c_cur_p = c_cur

    # ---- sizes / tiling ------------------------------------------------------
    n_pix = b * height * width
    tn = _pick_pixel_tile(n_pix)
    n_pad = _round_up(n_pix, tn)
    k_raw = c_tot * kh * kw
    k_pad = _round_up(k_raw, 16)         # clean bf16 (16,128) sublane packing

    # ---- glue (plain JAX): concat, bf16 cast, pad, im2col, weight repack ----
    # Cast to bf16 BEFORE materializing the 9x im2col buffer (dominant stream).
    combined = jnp.concatenate([x, h_cur], axis=1).astype(jnp.bfloat16)
    padded = jnp.pad(combined, ((0, 0), (0, 0), (ph, ph), (pw, pw)))
    padded_t = jnp.transpose(padded, (1, 0, 2, 3))       # (Ct, B, Hp, Wp), 1x data
    taps = [padded_t[:, :, dh:dh + height, dw:dw + width]
            for dh in range(kh) for dw in range(kw)]
    # (Ct, KH*KW, B, H, W) -> (Ct*KH*KW, B*H*W); feature order (c, kh, kw)
    # matches weight.reshape(4*hd, Ct*KH*KW).
    xcol = jnp.stack(taps, axis=1).reshape(k_raw, n_pix)
    xcol = jnp.pad(xcol, ((0, k_pad - k_raw), (0, n_pad - n_pix)))

    w_mat = weight.reshape(hd4, k_raw).astype(jnp.bfloat16)
    w_mat = jnp.pad(w_mat, ((0, 0), (0, k_pad - k_raw)))
    b_col = bias.reshape(hd4, 1).astype(jnp.float32)

    c_flat = jnp.transpose(c_cur_p, (1, 0, 2, 3)).reshape(hd_pad, n_pix)
    c_flat = jnp.pad(c_flat.astype(jnp.float32), ((0, 0), (0, n_pad - n_pix)))

    grid = (n_pad // tn,)
    h_out_bytes = jnp.dtype(x.dtype).itemsize
    kernel = functools.partial(_convlstm_kernel, hidden_dim=hd_pad)

    h_flat, c_next_flat = pl.pallas_call(
        kernel,
        out_shape=(
            jax.ShapeDtypeStruct((hd_pad, n_pad), x.dtype),
            jax.ShapeDtypeStruct((hd_pad, n_pad), jnp.float32),
        ),
        grid_spec=pltpu.PrefetchScalarGridSpec(
            num_scalar_prefetch=0,
            grid=grid,
            in_specs=[
                pl.BlockSpec((k_pad, tn), lambda j: (0, j)),
                pl.BlockSpec((hd4, k_pad), lambda j: (0, 0)),
                pl.BlockSpec((hd4, 1), lambda j: (0, 0)),
                pl.BlockSpec((hd_pad, tn), lambda j: (0, j)),
            ],
            out_specs=[
                pl.BlockSpec((hd_pad, tn), lambda j: (0, j)),
                pl.BlockSpec((hd_pad, tn), lambda j: (0, j)),
            ],
        ),
        compiler_params=pltpu.CompilerParams(
            dimension_semantics=("parallel",),
            vmem_limit_bytes=_vmem_limit_bytes(k_pad, tn, hd4, hd_pad,
                                               h_out_bytes),
        ),
    )(xcol, w_mat, b_col, c_flat)

    # (hidden, B*H*W) -> NCHW (1x-size transposes in the wrapper only).
    h_next = jnp.transpose(
        h_flat[:hd, :n_pix].reshape(hd, b, height, width), (1, 0, 2, 3))
    c_next = jnp.transpose(
        c_next_flat[:hd, :n_pix].reshape(hd, b, height, width), (1, 0, 2, 3))
    return h_next, c_next


# --------------------------------------------------------------------------
# Pure-JAX reference (mirrors the PyTorch forward)
# --------------------------------------------------------------------------
def _reference_forward(x, h_cur, c_cur, weight, bias, kernel_size,
                       quantize_bf16=False):
    """lax.conv reference.  With quantize_bf16=True the conv operands are
    rounded to bfloat16 (as the kernel's MXU operands are) while all math
    stays float32, giving a tight reference for the bf16-fed kernel."""
    kh, kw = kernel_size
    combined = jnp.concatenate([x, h_cur], axis=1)
    w = weight
    if quantize_bf16:
        combined = combined.astype(jnp.bfloat16).astype(jnp.float32)
        w = w.astype(jnp.bfloat16).astype(jnp.float32)
    conv = lax.conv_general_dilated(
        combined.astype(jnp.float32), w.astype(jnp.float32),
        window_strides=(1, 1),
        padding=((kh // 2, kh // 2), (kw // 2, kw // 2)),
        dimension_numbers=("NCHW", "OIHW", "NCHW"),
    ) + bias.astype(jnp.float32)[None, :, None, None]
    hd = h_cur.shape[1]
    cc_i, cc_f, cc_o, cc_g = jnp.split(conv, [hd, 2 * hd, 3 * hd], axis=1)
    i = jax.nn.sigmoid(cc_i)
    f = jax.nn.sigmoid(cc_f)
    o = jax.nn.sigmoid(cc_o)
    g = jnp.tanh(cc_g)
    c_next = f * c_cur.astype(jnp.float32) + i * g
    h_next = o * jnp.tanh(c_next)
    return h_next.astype(x.dtype), c_next


# --------------------------------------------------------------------------
if __name__ == "__main__":
    batch = 2
    input_dim = 4
    hidden_dim = 32
    height = width = 16
    kernel_size = (3, 3)

    key = jax.random.PRNGKey(0)
    kx, kh_, kc, kw_, kb = jax.random.split(key, 5)

    x = jax.random.normal(kx, (batch, input_dim, height, width), jnp.float32)
    h_cur = jax.random.normal(kh_, (batch, hidden_dim, height, width),
                              jnp.float32)
    c_cur = jax.random.normal(kc, (batch, hidden_dim, height, width),
                              jnp.float32)

    # Deterministic "nn.Conv2d" parameters (same shapes as the PyTorch module).
    c_total = input_dim + hidden_dim
    fan_in = c_total * kernel_size[0] * kernel_size[1]
    bound = 1.0 / jnp.sqrt(jnp.asarray(fan_in, jnp.float32))
    weight = jax.random.uniform(
        kw_, (4 * hidden_dim, c_total, kernel_size[0], kernel_size[1]),
        jnp.float32, -bound, bound)
    bias = jax.random.uniform(kb, (4 * hidden_dim,), jnp.float32, -bound, bound)

    h_next, c_next = convlstm_cell_forward(x, h_cur, c_cur, weight, bias,
                                           kernel_size)
    jax.block_until_ready((h_next, c_next))

    assert h_next.shape == (batch, hidden_dim, height, width)
    assert c_next.shape == (batch, hidden_dim, height, width)
    assert h_next.dtype == x.dtype
    assert c_next.dtype == jnp.float32

    # Tight check vs a reference fed the same bf16-rounded conv operands
    # (f32 accumulation both sides -> only accumulation-order differences).
    h_ref_q, c_ref_q = _reference_forward(x, h_cur, c_cur, weight, bias,
                                          kernel_size, quantize_bf16=True)
    assert jnp.allclose(h_next, h_ref_q, atol=2e-3, rtol=2e-3)
    assert jnp.allclose(c_next, c_ref_q, atol=2e-3, rtol=2e-3)

    # Loose check vs the full-f32 reference (bf16 MXU operands -> small error).
    h_ref, c_ref = _reference_forward(x, h_cur, c_cur, weight, bias,
                                      kernel_size)
    assert jnp.allclose(h_next, h_ref, atol=5e-2, rtol=5e-2)
    assert jnp.allclose(c_next, c_ref, atol=5e-2, rtol=5e-2)

    print("KERNEL_OK")
</pallas_src>

<mosaic_0001>
module attributes {stable_mosaic.version = 11 : i64} {
  func.func @_convlstm_kernel(%arg0: i32, %arg1: memref<336x256xbf16, #tpu.memory_space<vmem>>, %arg2: memref<128x336xbf16, #tpu.memory_space<vmem>>, %arg3: memref<128x1xf32, #tpu.memory_space<vmem>>, %arg4: memref<32x256xf32, #tpu.memory_space<vmem>>, %arg5: memref<32x256xf32, #tpu.memory_space<vmem>>, %arg6: memref<32x256xf32, #tpu.memory_space<vmem>>) attributes {dimension_semantics = [#tpu.dimension_semantics<parallel>], iteration_bounds = array<i64: 2>, scalar_prefetch = 0 : i64, scratch_operands = 0 : i64, tpu.core_type = #tpu.core_type<tc>, window_params = [{transform_indices = @transform_0, window_bounds = array<i64: 336, 256>}, {pipeline_mode = #tpu.pipeline_mode<synchronous>, transform_indices = @transform_1, window_bounds = array<i64: 128, 336>}, {pipeline_mode = #tpu.pipeline_mode<synchronous>, transform_indices = @transform_2, window_bounds = array<i64: 128, 1>}, {transform_indices = @transform_3, window_bounds = array<i64: 32, 256>}, {transform_indices = @transform_4, window_bounds = array<i64: 32, 256>}, {transform_indices = @transform_5, window_bounds = array<i64: 32, 256>}]} {
    %c0 = arith.constant 0 : index
    %c0_0 = arith.constant 0 : index
    %0 = vector.load %arg2[%c0, %c0_0] : memref<128x336xbf16, #tpu.memory_space<vmem>>, vector<128x336xbf16>
    %c0_1 = arith.constant 0 : index
    %c0_2 = arith.constant 0 : index
    %1 = vector.load %arg1[%c0_1, %c0_2] : memref<336x256xbf16, #tpu.memory_space<vmem>>, vector<336x256xbf16>
    %cst = arith.constant dense<0.000000e+00> : vector<128x256xf32>
    %2 = tpu.matmul %0, %1, %cst {dimension_numbers = #tpu.dot_dimension_numbers<[1], [0], [0], [1], [0, 0, 1, 1], [], []>} : vector<128x336xbf16>, vector<336x256xbf16>, vector<128x256xf32> -> vector<128x256xf32>
    %c0_3 = arith.constant 0 : index
    %c0_4 = arith.constant 0 : index
    %3 = vector.load %arg3[%c0_3, %c0_4] : memref<128x1xf32, #tpu.memory_space<vmem>>, vector<128x1xf32>
    %4 = vector.broadcast %3 : vector<128x1xf32> to vector<128x256xf32>
    %5 = arith.addf %2, %4 : vector<128x256xf32>
    %6 = vector.extract_strided_slice %5 {offsets = [0, 0], sizes = [32, 256], strides = [1, 1]} : vector<128x256xf32> to vector<32x256xf32>
    %cst_5 = arith.constant 5.000000e-01 : f32
    %7 = vector.broadcast %cst_5 : f32 to vector<32x256xf32>
    %8 = arith.mulf %7, %6 : vector<32x256xf32>
    %9 = math.tanh %8 : vector<32x256xf32>
    %cst_6 = arith.constant 5.000000e-01 : f32
    %10 = vector.broadcast %cst_6 : f32 to vector<32x256xf32>
    %11 = arith.mulf %10, %9 : vector<32x256xf32>
    %cst_7 = arith.constant 5.000000e-01 : f32
    %12 = vector.broadcast %cst_7 : f32 to vector<32x256xf32>
    %13 = arith.addf %11, %12 : vector<32x256xf32>
    %14 = vector.extract_strided_slice %5 {offsets = [32, 0], sizes = [32, 256], strides = [1, 1]} : vector<128x256xf32> to vector<32x256xf32>
    %cst_8 = arith.constant 5.000000e-01 : f32
    %15 = vector.broadcast %cst_8 : f32 to vector<32x256xf32>
    %16 = arith.mulf %15, %14 : vector<32x256xf32>
    %17 = math.tanh %16 : vector<32x256xf32>
    %cst_9 = arith.constant 5.000000e-01 : f32
    %18 = vector.broadcast %cst_9 : f32 to vector<32x256xf32>
    %19 = arith.mulf %18, %17 : vector<32x256xf32>
    %cst_10 = arith.constant 5.000000e-01 : f32
    %20 = vector.broadcast %cst_10 : f32 to vector<32x256xf32>
    %21 = arith.addf %19, %20 : vector<32x256xf32>
    %22 = vector.extract_strided_slice %5 {offsets = [64, 0], sizes = [32, 256], strides = [1, 1]} : vector<128x256xf32> to vector<32x256xf32>
    %cst_11 = arith.constant 5.000000e-01 : f32
    %23 = vector.broadcast %cst_11 : f32 to vector<32x256xf32>
    %24 = arith.mulf %23, %22 : vector<32x256xf32>
    %25 = math.tanh %24 : vector<32x256xf32>
    %cst_12 = arith.constant 5.000000e-01 : f32
    %26 = vector.broadcast %cst_12 : f32 to vector<32x256xf32>
    %27 = arith.mulf %26, %25 : vector<32x256xf32>
    %cst_13 = arith.constant 5.000000e-01 : f32
    %28 = vector.broadcast %cst_13 : f32 to vector<32x256xf32>
    %29 = arith.addf %27, %28 : vector<32x256xf32>
    %30 = vector.extract_strided_slice %5 {offsets = [96, 0], sizes = [32, 256], strides = [1, 1]} : vector<128x256xf32> to vector<32x256xf32>
    %31 = math.tanh %30 : vector<32x256xf32>
    %c0_14 = arith.constant 0 : index
    %c0_15 = arith.constant 0 : index
    %32 = vector.load %arg4[%c0_14, %c0_15] : memref<32x256xf32, #tpu.memory_space<vmem>>, vector<32x256xf32>
    %33 = arith.mulf %21, %32 : vector<32x256xf32>
    %34 = arith.mulf %13, %31 : vector<32x256xf32>
    %35 = arith.addf %33, %34 : vector<32x256xf32>
    %36 = math.tanh %35 : vector<32x256xf32>
    %37 = arith.mulf %29, %36 : vector<32x256xf32>
    %c0_16 = arith.constant 0 : index
    %c0_17 = arith.constant 0 : index
    %38 = vector.load %arg5[%c0_16, %c0_17] : memref<32x256xf32, #tpu.memory_space<vmem>>, vector<32x256xf32>
    tpu.vector_store %arg5[%c0_16, %c0_17], %37 {strides = array<i32>} : memref<32x256xf32, #tpu.memory_space<vmem>>, vector<32x256xf32>,
    %c0_18 = arith.constant 0 : index
    %c0_19 = arith.constant 0 : index
    %39 = vector.load %arg6[%c0_18, %c0_19] : memref<32x256xf32, #tpu.memory_space<vmem>>, vector<32x256xf32>
    tpu.vector_store %arg6[%c0_18, %c0_19], %35 {strides = array<i32>} : memref<32x256xf32, #tpu.memory_space<vmem>>, vector<32x256xf32>,
    return
  }
  func.func @transform_0(%arg0: i32) -> (i32, i32) {
    %c0_i32 = arith.constant 0 : i32
    %c0_i32_0 = arith.constant 0 : i32
    return %c0_i32, %arg0 : i32, i32
  }
  func.func @transform_1(%arg0: i32) -> (i32, i32) {
    %c0_i32 = arith.constant 0 : i32
    %c0_i32_0 = arith.constant 0 : i32
    %c0_i32_1 = arith.constant 0 : i32
    return %c0_i32, %c0_i32_0 : i32, i32
  }
  func.func @transform_2(%arg0: i32) -> (i32, i32) {
    %c0_i32 = arith.constant 0 : i32
    %c0_i32_0 = arith.constant 0 : i32
    %c0_i32_1 = arith.constant 0 : i32
    return %c0_i32, %c0_i32_0 : i32, i32
  }
  func.func @transform_3(%arg0: i32) -> (i32, i32) {
    %c0_i32 = arith.constant 0 : i32
    %c0_i32_0 = arith.constant 0 : i32
    return %c0_i32, %arg0 : i32, i32
  }
  func.func @transform_4(%arg0: i32) -> (i32, i32) {
    %c0_i32 = arith.constant 0 : i32
    %c0_i32_0 = arith.constant 0 : i32
    return %c0_i32, %arg0 : i32, i32
  }
  func.func @transform_5(%arg0: i32) -> (i32, i32) {
    %c0_i32 = arith.constant 0 : i32
    %c0_i32_0 = arith.constant 0 : i32
    return %c0_i32, %arg0 : i32, i32
  }
}

</mosaic_0001>

<bundles_post_ra>
// kernel: tpu_custom_call.1
= control target key start
LH: loop header
LB: loop body
LE: loop exit
PB: predicated region body
PF: predicated region fallthrough
CT: control target
= control target key end

     0   :  { %11 = vsyncpa [#allocation3], 0  ;;  %s2955_s0 = inlined_call_operand.hbm [shape: bf16[336,512], index: 0, kind: input, shape index: {}]   ;;  %s2956_s1 = inlined_call_operand.vmem [shape: bf16[128,336], index: 1, kind: input, shape index: {}]   ;;  %s2957_s2 = inlined_call_operand.vmem [shape: f32[128,1], index: 2, kind: input, shape index: {}]   ;;  %s2958_s3 = inlined_call_operand.vmem [shape: f32[32,512], index: 3, kind: input, shape index: {}]   ;;  %s2959_s4 = inlined_call_operand.hbm [shape: f32[32,512], index: 4, kind: output, shape index: {0}]   ;;  %s2960_s5 = inlined_call_operand.hbm [shape: f32[32,512], index: 5, kind: output, shape index: {1}]  }
   0x1   :  { %13 = vsyncpa [#allocation3 + $0x1], 0 }
   0x2   :  { %14 = vsyncpa [#allocation4], 0 }
   0x3   :  { %16 = vsyncpa [#allocation4 + $0x1], 0 }
   0x4   :  { %17 = vsyncpa [#allocation8], 0 }
   0x5   :  { %19 = vsyncpa [#allocation8 + $0x1], 0  ;;  %s2150_s18 = smov 0   ;;  %s2152_s19 = smov 0  }
   0x6   :  { %s2154_s20 = smov 0   ;;  %s2156_s21 = smov 0  }
   0x7 LB: > { %2962 = sst [smem:[#allocation12_spill]] %s2107_s20  ;;  %s2171_s22 = sadd.s32 4294967295, %s2111_s21   ;;  %s2111_s21 = sphi %s2156_s21, %s2982_s21   ;;  %s2107_s20 = sphi %s2154_s20, %s2979_s20   ;;  %s2103_s19 = sphi %s2152_s19, %s2981_s19   ;;  %s2099_s18 = sphi %s2150_s18, %s2980_s18  }
   0x8   : > { %s1464_s23 = sadd.s32 4294967294, %s2111_s21   ;;  %s2175_s24 = sadd.s32 1, %s2111_s21  }
   0x9   : > { %s32_s25 = sadd.s32 1, %s2107_s20  ;;  %s29_s26 = ssub.s32 %s2111_s21, %s2175_s24 }
   0xa   : > { %p39_p0 = scmp.ne.s32.totalorder %s2107_s20, %s2103_s19  ;;  %p30_p1 = scmp.eq.s32.totalorder %s29_s26, 0 }
   0xb   : > { %p40_p2 = scmp.eq.s32.totalorder %s2111_s21, 0  ;;  %p45_p3 = scmp.ne.s32.totalorder %s2103_s19, %s2099_s18 }
   0xc   : > { %p46_p4 = scmp.eq.s32.totalorder %s2171_s22, 0  ;;  %p137_p7 = scmp.eq.s32.totalorder %s2171_s22, 1 }
   0xd   : > { %s2187_s27 = scalar_select %p30_p1, %s2107_s20, %s32_s25  }
   0xe   : > { %p2189_p5 = por %p40_p2, %p39_p0  ;;  %p2193_p6 = por %p46_p4, %p45_p3 }
   0xf   : > { %2963 = sst [smem:[#allocation13_spill]] %s2187_s27  ;;  %p143_p8 = scmp.eq.s32.totalorder %s1464_s23, 1 }
  0x10   : > { %p2198_p9 = por %p137_p7, %p39_p0  ;;  %p1466_p11 = scmp.ge.s32.totalorder %s2111_s21, 2 }
  0x11   : > { %p2202_p10 = por %p143_p8, %p45_p3  ;;  %s2210_s7 = sand.u32 (!%p1466_p11), 1, %s2107_s20  }
  0x12   : > { %191 = sbr.rel (%p1466_p11) target bundleno = 46 (0x2e), region = 24  ;;  %s1764_s8 = sshll.u32 (!%p1466_p11), %s2111_s21, 3 }
  0x13   : > { %s1847_s9 = smul.u32 (!%p1466_p11), 336, %s2210_s7  ;;  %s204_s12 = scalar_lea.hbm (!%p1466_p11), %s2955_s0, %s1764_s8 }
  0x14   : > { %s205_s13 = sshll.u32 (!%p1466_p11), %s204_s12, 4  ;;  %s196_s16 = scalar_lea.sflag (!%p1466_p11), [#allocation3], %s2210_s7  ;;  %s206_s13 = int_to_ptr.hbm [resolvable:$true] %s205_s13 }
  0x15   : > { %s199_s14 = scalar_lea.vmem (!%p1466_p11), [#allocation2], %s1847_s9  ;;  %s1985_s17 = sshra.s32 (!%p1466_p11), %s206_s13, 4  ;;  %s1986_s17 = int_to_ptr.hbm [resolvable:$true] %s1985_s17 }
  0x16   : > { %s207_s15 = sshll.u32 (!%p1466_p11), %s199_s14, 4  ;;  %s1987_s23 = scalar_lea.hbm (!%p1466_p11), %s1986_s17, 336  ;;  %s208_s15 = int_to_ptr.vmem [resolvable:$true] %s207_s15 }
  0x17   : > { %p1988_p12 = scmp.ne.s32.totalorder %s1986_s17, %s1987_s23  ;;  %s1991_s27 = scalar_lea.hbm %s2955_s0, 672 }
  0x18   : > { %p1992_p1 = scmp.lt.s32.totalorder %s1986_s17, %s2955_s0  ;;  %p1993_p2 = scmp.lt.s32.totalorder %s1991_s27, %s1987_s23 }
  0x19   : > { %p1989_p13 = pnand %p1988_p12, %p2189_p5 }
  0x1a   : > { %p1994_p3 = por %p1993_p2, %p1992_p1 }
  0x1b   : > { %p1990_p0 = pneg %p1989_p13 }
  0x1d   : > { %p1995_p4 = pnand %p1994_p3, %p1990_p0 }
  0x1f   : > { %1998 = shalt.err (!%p1995_p4)
}
  0x20   : > { %s2113_s8 = smov 256   ;;  %s2114_s9 = smov 128  }
  0x21   : > { %s2115_s11 = smov 8   ;;  %216 = sbr.rel (!%p2189_p5) target bundleno = 46 (0x2e), region = 32 }
  0x22   : > { %1849 = dma.hbm_to_vmem [thread:$0]  (%p2189_p5), %s206_s13, 5376, %s208_s15, %s196_s16, %s2113_s8, %s2114_s9, %s2115_s11  }
  0x23   : > { %s1469_s12 = sshll.u32 (%p2189_p5), %s2210_s7, 6  ;;  %s1765_s14 = sshll.u32 (%p2189_p5), %s2111_s21, 4 }
  0x24   : > { %s223_s27 = scalar_lea.vmem (%p2189_p5), %s2958_s3, %s1765_s14  ;;  %s220_s17 = scalar_lea.vmem (%p2189_p5), [#allocation5], %s1469_s12 }
  0x25   : > { %v236_v0 = vld [vmem:[%s223_s27] sm:$0xff] (%p2189_p5)  ;;  %v238_v1 = vld [vmem:[%s223_s27 + $0x8] sm:$0xff] (%p2189_p5) }
  0x26   : > { %v240_v2 = vld [vmem:[%s223_s27 + $0x20] sm:$0xff]  ;;  %237 = vst [vmem:[%s220_s17] sm:$0xff] %v236_v0  ;;  %v242_v3 = vld [vmem:[%s223_s27 + $0x28] sm:$0xff] }
  0x27   : > { %239 = vst [vmem:[%s220_s17 + $0x8] sm:$0xff] %v238_v1  ;;  %v244_v4 = vld [vmem:[%s223_s27 + $0x40] sm:$0xff]  ;;  %v246_v5 = vld [vmem:[%s223_s27 + $0x48] sm:$0xff] }
  0x28   : > { %241 = vst [vmem:[%s220_s17 + $0x10] sm:$0xff] %v240_v2  ;;  %v248_v6 = vld [vmem:[%s223_s27 + $0x60] sm:$0xff]  ;;  %v250_v7 = vld [vmem:[%s223_s27 + $0x68] sm:$0xff] }
  0x29   : > { %243 = vst [vmem:[%s220_s17 + $0x18] sm:$0xff] %v242_v3 }
  0x2a   : > { %245 = vst [vmem:[%s220_s17 + $0x20] sm:$0xff] %v244_v4 }
  0x2b   : > { %247 = vst [vmem:[%s220_s17 + $0x28] sm:$0xff] %v246_v5 }
  0x2c   : > { %249 = vst [vmem:[%s220_s17 + $0x30] sm:$0xff] %v248_v6 }
  0x2d   : > { %251 = vst [vmem:[%s220_s17 + $0x38] sm:$0xff] %v250_v7 }
  0x2e PF: > { %p1472_p5 = scmp.ge.s32.totalorder %s2111_s21, 1  ;;  %p256_p7 = scmp.lt.s32.totalorder %s2111_s21, 3 }
  0x30   : > { %p257_p8 = pnand %p1472_p5, %p256_p7 }
  0x32   : > { %260 = sbr.rel (%p257_p8) target bundleno = 450 (0x1c2), region = 55 }
  0x37   : > { %s2238_s28 = sand.u32 1, %s2103_s19  }
  0x38   : > { %s1848_s7 = smul.u32 336, %s2238_s28  ;;  %s263_s13 = scalar_lea.sflag [#allocation3], %s2238_s28 }
  0x3a   : > { %s2242_s15 = scalar_lea.vmem [#allocation2], %s1848_s7 }
  0x3b   : > { %2086 = dma.done.wait (%p2193_p6), %s263_s13, 5376  }
  0x3c   : > { %2088 = vsyncadd (%p2193_p6), %s263_s13, 4294961920  ;;  %v2116_v8 = vmov 0   ;;  %v1630_v9 = vld [vmem:[%s2242_s15 + $0x70] sm:$0xf]  ;;  %v1805_v10 = vld [vmem:[%s2242_s15 + $0x74] sm:$0xf0] }
  0x3d   : > { %1903 = vset.pattern.permute.xlu1 %v2116_v8  ;;  %1902 = vset.pattern.permute.xlu0 %v2116_v8  ;;  %v1734_v11 = vld [vmem:[%s2242_s15 + $0x140] sm:$0xf]  ;;  %v1631_v12 = vor.u32 %v1805_v10, %v1630_v9  ;;  %v1831_v13 = vld [vmem:[%s2242_s15 + $0x144] sm:$0xf0]  ;;  %v1726_v17 = vld [vmem:[%s2242_s15 + $0x130] sm:$0xf] }
  0x3e   : > { %1904 = vset.pattern.permute.xlu2 %v2116_v8  ;;  %v1622_v14 = vld [vmem:[%s2242_s15 + $0x60] sm:$0xf]  ;;  %v1803_v15 = vld [vmem:[%s2242_s15 + $0x64] sm:$0xf0]  ;;  %v1735_v16 = vor.u32 %v1831_v13, %v1734_v11  ;;  %v1829_v18 = vld [vmem:[%s2242_s15 + $0x134] sm:$0xf0] }
  0x3f   : > { %1834 = vmatpush.bf16.msra.mxu1 %v1631_v12  ;;  %840 = vmatpush.bf16.msra.mxu0 %v1631_v12  ;;  %v1623_v19 = vor.u32 %v1803_v15, %v1622_v14  ;;  %v1727_v20 = vor.u32 %v1829_v18, %v1726_v17  ;;  %v1614_v21 = vld [vmem:[%s2242_s15 + $0x50] sm:$0xf]  ;;  %v1801_v22 = vld [vmem:[%s2242_s15 + $0x54] sm:$0xf0]  ;;  %v1718_v23 = vld [vmem:[%s2242_s15 + $0x120] sm:$0xf] }
  0x40   : > { %941 = vmatpush.bf16.msra.mxu2 %v1735_v16  ;;  %1842 = vmatpush.bf16.msra.mxu3 %v1735_v16  ;;  %v1827_v24 = vld [vmem:[%s2242_s15 + $0x124] sm:$0xf0]  ;;  %v1615_v25 = vor.u32 %v1801_v22, %v1614_v21  ;;  %v1606_v26 = vld [vmem:[%s2242_s15 + $0x40] sm:$0xf]  ;;  %v1710_v31 = vld [vmem:[%s2242_s15 + $0x110] sm:$0xf] }
  0x41   : > { %v1719_v27 = vor.u32 %v1827_v24, %v1718_v23  ;;  %v1799_v28 = vld [vmem:[%s2242_s15 + $0x44] sm:$0xf0]  ;;  %v391_v29 = vld [vmem:[%s2957_s2 + $0x10] sm:$0xff]  ;;  %v389_v30 = vld [vmem:[%s2957_s2] sm:$0xff]  ;;  %vm815_vm0 = vcmask 654336   ;;  %s2781_s17 = sshll.u32 %s2238_s28, 6 }
  0x42   : > { %v1825_v32 = vld [vmem:[%s2242_s15 + $0x114] sm:$0xf0]  ;;  %417 = vperm.xlu1 %1903, %v391_v29   ;;  %407 = vperm.xlu0 %1902, %v389_v30   ;;  %v1607_v33 = vor.u32 %v1799_v28, %v1606_v26  ;;  %v1598_v35 = vld [vmem:[%s2242_s15 + $0x30] sm:$0xf]  ;;  %v1702_v37 = vld [vmem:[%s2242_s15 + $0x100] sm:$0xf] }
  0x43   : > { %1835 = vmatpush.bf16.msra.mxu1 %v1623_v19  ;;  %841 = vmatpush.bf16.msra.mxu0 %v1623_v19  ;;  %v1711_v34 = vor.u32 %v1825_v32, %v1710_v31  ;;  %v1797_v36 = vld [vmem:[%s2242_s15 + $0x34] sm:$0xf0]  ;;  %v1823_v38 = vld [vmem:[%s2242_s15 + $0x104] sm:$0xf0]  ;;  %v1820_v39 = vld [vmem:[%s2242_s15 + $0xf4] sm:$0xf] }
  0x44   : > { %942 = vmatpush.bf16.msra.mxu2 %v1727_v20  ;;  %1843 = vmatpush.bf16.msra.mxu3 %v1727_v20  ;;  %v1696_v40 = vld [vmem:[%s2242_s15 + $0xf8] sm:$0xf0]  ;;  %v1599_v43 = vor.u32 %v1797_v36, %v1598_v35  ;;  %v1486_v44 = vld [vmem:[%s2956_s1 + $0x8] sm:$0xf]  ;;  %v1768_v45 = vld [vmem:[%s2956_s1 + $0x10] sm:$0xf0]  ;;  %v1703_v47 = vor.u32 %v1823_v38, %v1702_v37 }
  0x45   : > { %v392_v41 = vld [vmem:[%s2957_s2 + $0x18] sm:$0xff]  ;;  %v390_v42 = vld [vmem:[%s2957_s2 + $0x8] sm:$0xff]  ;;  %v1590_v46 = vld [vmem:[%s2242_s15 + $0x20] sm:$0xf]  ;;  %v1699_v51 = vor.u32 %v1820_v39, %v1696_v40  ;;  %v2300_v57 = vor.u32 %v1768_v45, %v1486_v44  ;;  %s2807_s7 = scalar_lea.vmem [#allocation5], %s2781_s17  ;;  %s2839_s13 = scalar_lea.vmem [#allocation7], %s2781_s17 }
  0x46   : > { %v1795_v48 = vld [vmem:[%s2242_s15 + $0x24] sm:$0xf0]  ;;  %v1804_v49 = vld [vmem:[%s2242_s15 + $0x74] sm:$0xf]  ;;  %v1632_v50 = vld [vmem:[%s2242_s15 + $0x78] sm:$0xf0] }
  0x47   : > { %1836 = vmatpush.bf16.msra.mxu1 %v1615_v25  ;;  %842 = vmatpush.bf16.msra.mxu0 %v1615_v25  ;;  %v1546_v52 = vld [vmem:[%s2956_s1 + $0x80] sm:$0xf]  ;;  %v1783_v53 = vld [vmem:[%s2956_s1 + $0x88] sm:$0xf0]  ;;  %v1635_v54 = vor.u32 %v1804_v49, %v1632_v50  ;;  %v1818_v55 = vld [vmem:[%s2242_s15 + $0xe4] sm:$0xf]  ;;  %v1591_v58 = vor.u32 %v1795_v48, %v1590_v46 }
  0x48   : > { %943 = vmatpush.bf16.msra.mxu2 %v1719_v27  ;;  %1844 = vmatpush.bf16.msra.mxu3 %v1719_v27  ;;  %v1688_v56 = vld [vmem:[%s2242_s15 + $0xe8] sm:$0xf0]  ;;  %v1802_v59 = vld [vmem:[%s2242_s15 + $0x64] sm:$0xf]  ;;  %v2304_v61 = vor.u32 %v1783_v53, %v1546_v52  ;;  %v1582_v62 = vld [vmem:[%s2242_s15 + $0x10] sm:$0xf] }
  0x49   : > { %v1624_v60 = vld [vmem:[%s2242_s15 + $0x68] sm:$0xf0]  ;;  %v1793_v63 = vld [vmem:[%s2242_s15 + $0x14] sm:$0xf0]  ;;  %v1691_v0 = vor.u32 %v1818_v55, %v1688_v56  ;;  %v1816_v2 = vld [vmem:[%s2242_s15 + $0xd4] sm:$0xf] }
  0x4a   : > { %422 = vperm.xlu1 %1903, %v392_v41   ;;  %412 = vperm.xlu0 %1902, %v390_v42   ;;  %v396_v1 = vld [vmem:[%s2957_s2 + $0x38] sm:$0xff]  ;;  %v1627_v4 = vor.u32 %v1802_v59, %v1624_v60  ;;  %v1583_v5 = vor.u32 %v1793_v63, %v1582_v62  ;;  %v395_v6 = vld [vmem:[%s2957_s2 + $0x30] sm:$0xff]  ;;  %v1526_v11 = vld [vmem:[%s2956_s1 + $0x60] sm:$0xf]  ;;  %s2863_s29 = scalar_lea.vmem [#allocation6], %s2781_s17  ;;  %s1832_s16 = sshll.u32 %s2171_s22, 4 }
  0x4b   : > { %1837 = vmatpush.bf16.msra.mxu1 %v1607_v33  ;;  %843 = vmatpush.bf16.msra.mxu0 %v1607_v33  ;;  %v1680_v3 = vld [vmem:[%s2242_s15 + $0xd8] sm:$0xf0]  ;;  %v1800_v7 = vld [vmem:[%s2242_s15 + $0x54] sm:$0xf]  ;;  %v1574_v9 = vld [vmem:[%s2242_s15] sm:$0xf]  ;;  %s1336_s10 = scalar_lea.hbm %s2960_s5, %s1832_s16  ;;  %s1319_s12 = scalar_lea.hbm %s2959_s4, %s1832_s16 }
  0x4c   : > { %944 = vmatpush.bf16.msra.mxu2 %v1711_v34  ;;  %1845 = vmatpush.bf16.msra.mxu3 %v1711_v34  ;;  %v1616_v8 = vld [vmem:[%s2242_s15 + $0x58] sm:$0xf0]  ;;  %v1791_v10 = vld [vmem:[%s2242_s15 + $0x4] sm:$0xf0]  ;;  %v1683_v12 = vor.u32 %v1816_v2, %v1680_v3  ;;  %v1694_v13 = vld [vmem:[%s2242_s15 + $0xf0] sm:$0xf] }
  0x4d   : > { %v1821_v14 = vld [vmem:[%s2242_s15 + $0xf4] sm:$0xf0]  ;;  %v1779_v15 = vld [vmem:[%s2956_s1 + $0x68] sm:$0xf0]  ;;  %v1830_v16 = vld [vmem:[%s2242_s15 + $0x144] sm:$0xf]  ;;  %v1619_v18 = vor.u32 %v1800_v7, %v1616_v8  ;;  %v1575_v19 = vor.u32 %v1791_v10, %v1574_v9 }
  0x4e   : > { %v1736_v17 = vld [vmem:[%s2242_s15 + $0x148] sm:$0xf0]  ;;  %v1478_v20 = vld [vmem:[%s2956_s1] sm:$0xf]  ;;  %v1695_v23 = vor.u32 %v1821_v14, %v1694_v13  ;;  %v1819_v24 = vld [vmem:[%s2242_s15 + $0xe4] sm:$0xf0]  ;;  %v2349_v31 = vor.u32 %v1779_v15, %v1526_v11 }
  0x4f   : > { %1838 = vmatpush.bf16.msra.mxu1 %v1599_v43  ;;  %844 = vmatpush.bf16.msra.mxu0 %v1599_v43  ;;  %v1767_v21 = vld [vmem:[%s2956_s1 + $0x8] sm:$0xf0]  ;;  %v1686_v22 = vld [vmem:[%s2242_s15 + $0xe0] sm:$0xf]  ;;  %v1814_v25 = vld [vmem:[%s2242_s15 + $0xc4] sm:$0xf]  ;;  %v1739_v27 = vor.u32 %v1830_v16, %v1736_v17 }
  0x50   : > { %945 = vmatpush.bf16.msra.mxu2 %v1703_v47  ;;  %1846 = vmatpush.bf16.msra.mxu3 %v1703_v47  ;;  %v1672_v26 = vld [vmem:[%s2242_s15 + $0xc8] sm:$0xf0]  ;;  %v1798_v28 = vld [vmem:[%s2242_s15 + $0x44] sm:$0xf]  ;;  %v1828_v33 = vld [vmem:[%s2242_s15 + $0x134] sm:$0xf]  ;;  %v2356_v35 = vor.u32 %v1767_v21, %v1478_v20  ;;  %v1687_v41 = vor.u32 %v1819_v24, %v1686_v22 }
  0x51   : > { %v1608_v29 = vld [vmem:[%s2242_s15 + $0x48] sm:$0xf0]  ;;  %v393_v30 = vld [vmem:[%s2957_s2 + $0x20] sm:$0xff]  ;;  %v403_v32 = vld [vmem:[%s2957_s2 + $0x70] sm:$0xff]  ;;  %v1675_v37 = vor.u32 %v1814_v25, %v1672_v26  ;;  %s1337_s8 = sshll.u32 %s2839_s13, 4  ;;  %s1339_s9 = sshll.u32 %s1336_s10, 4  ;;  %s2900_s8 = int_to_ptr.vmem [resolvable:$true] %s1337_s8  ;;  %s1340_s9 = int_to_ptr.hbm [resolvable:$true] %s1339_s9 }
  0x52   : > { %442 = vperm.xlu1 %1903, %v396_v1   ;;  %437 = vperm.xlu0 %1902, %v395_v6   ;;  %v1728_v34 = vld [vmem:[%s2242_s15 + $0x138] sm:$0xf0]  ;;  %v1498_v38 = vld [vmem:[%s2956_s1 + $0x20] sm:$0xf]  ;;  %v1558_v40 = vld [vmem:[%s2956_s1 + $0x98] sm:$0xf]  ;;  %v1611_v42 = vor.u32 %v1798_v28, %v1608_v29 }
  0x53   : > { %1740 = vmatmul.msk.bf16.vlgmr.msra.gmra.mxu2 %vm815_vm0, %v2300_v57  ;;  %1839 = vmatpush.bf16.msra.mxu1 %v1591_v58  ;;  %v402_v36 = vld [vmem:[%s2957_s2 + $0x68] sm:$0xff]  ;;  %v1786_v43 = vld [vmem:[%s2956_s1 + $0xa0] sm:$0xf0]  ;;  %v1731_v44 = vor.u32 %v1828_v33, %v1728_v34  ;;  %v1678_v45 = vld [vmem:[%s2242_s15 + $0xd0] sm:$0xf]  ;;  %s1308_s14 = scalar_lea.sflag [#allocation8], %s2238_s28 }
  0x54   : > { %1036 = vmatpush.bf16.msrb.mxu2 %v1699_v51  ;;  %987 = vmatpush.bf16.msrb.mxu3 %v1635_v54  ;;  %v1771_v39 = vld [vmem:[%s2956_s1 + $0x28] sm:$0xf0]  ;;  %v1817_v46 = vld [vmem:[%s2242_s15 + $0xd4] sm:$0xf0]  ;;  %v1796_v47 = vld [vmem:[%s2242_s15 + $0x34] sm:$0xf]  ;;  %v2383_v52 = vor.u32 %v1786_v43, %v1558_v40 }
  0x55   : > { %1745 = vmatmul.msk.bf16.vlgmr.msra.gmra.mxu3 %vm815_vm0, %v2304_v61  ;;  %845 = vmatpush.bf16.msra.mxu0 %v1591_v58  ;;  %v1600_v48 = vld [vmem:[%s2242_s15 + $0x38] sm:$0xf0]  ;;  %v2379_v49 = vor.u32 %v1771_v39, %v1498_v38  ;;  %v1812_v50 = vld [vmem:[%s2242_s15 + $0xb4] sm:$0xf]  ;;  %v1679_v53 = vor.u32 %v1817_v46, %v1678_v45  ;;  %v1670_v55 = vld [vmem:[%s2242_s15 + $0xc0] sm:$0xf] }
  0x56   : > { %427 = vperm.xlu2 %1904, %v393_v30   ;;  %v1664_v51 = vld [vmem:[%s2242_s15 + $0xb8] sm:$0xf0]  ;;  %v1603_v54 = vor.u32 %v1796_v47, %v1600_v48  ;;  %v1815_v56 = vld [vmem:[%s2242_s15 + $0xc4] sm:$0xf0]  ;;  %v1794_v59 = vld [vmem:[%s2242_s15 + $0x24] sm:$0xf] }
  0x57   : > { %1840 = vmatpush.bf16.msra.mxu1 %v1583_v5  ;;  %v398_v58 = vld [vmem:[%s2957_s2 + $0x48] sm:$0xff]  ;;  %v1667_v62 = vor.u32 %v1812_v50, %v1664_v51  ;;  %v397_v63 = vld [vmem:[%s2957_s2 + $0x40] sm:$0xff]  ;;  %v1671_v2 = vor.u32 %v1815_v56, %v1670_v55  ;;  %v1538_v13 = vld [vmem:[%s2956_s1 + $0x78] sm:$0xf]  ;;  %s2027_s25 = sshra.s32 %s1340_s9, 4  ;;  %s2028_s25 = int_to_ptr.hbm [resolvable:$true] %s2027_s25 }
  0x58   : > { %1037 = vmatpush.bf16.msrb.mxu2 %v1691_v0  ;;  %988 = vmatpush.bf16.msrb.mxu3 %v1627_v4  ;;  %v1592_v60 = vld [vmem:[%s2242_s15 + $0x28] sm:$0xf0]  ;;  %v1810_v1 = vld [vmem:[%s2242_s15 + $0xa4] sm:$0xf]  ;;  %v1662_v8 = vld [vmem:[%s2242_s15 + $0xb0] sm:$0xf]  ;;  %p2034_p0 = scmp.lt.s32.totalorder %s2028_s25, %s2960_s5 }
  0x59   : > { %846 = vmatpush.bf16.msra.mxu0 %v1583_v5  ;;  %v394_v0 = vld [vmem:[%s2957_s2 + $0x28] sm:$0xff]  ;;  %v1826_v4 = vld [vmem:[%s2242_s15 + $0x124] sm:$0xf]  ;;  %v1595_v6 = vor.u32 %v1794_v59, %v1592_v60  ;;  %v1792_v10 = vld [vmem:[%s2242_s15 + $0x14] sm:$0xf]  ;;  %s2029_s20 = scalar_lea.hbm %s2028_s25, 64 }
  0x5a   : > { %477 = vperm.xlu1 %1903, %v403_v32   ;;  %472 = vperm.xlu0 %1902, %v402_v36   ;;  %v1656_v3 = vld [vmem:[%s2242_s15 + $0xa8] sm:$0xf0]  ;;  %v1813_v9 = vld [vmem:[%s2242_s15 + $0xb4] sm:$0xf0]  ;;  %v1584_v11 = vld [vmem:[%s2242_s15 + $0x18] sm:$0xf0]  ;;  %p2030_p6 = scmp.ne.s32.totalorder %s2028_s25, %s2029_s20 }
  0x5b   : > { %1841 = vmatpush.bf16.msra.mxu1 %v1575_v19  ;;  %v1720_v5 = vld [vmem:[%s2242_s15 + $0x128] sm:$0xf0]  ;;  %v1782_v14 = vld [vmem:[%s2956_s1 + $0x80] sm:$0xf0]  ;;  %v1490_v15 = vld [vmem:[%s2956_s1 + $0x18] sm:$0xf]  ;;  %v1663_v17 = vor.u32 %v1813_v9, %v1662_v8 }
  0x5c   : > { %1038 = vmatpush.bf16.msrb.mxu2 %v1683_v12  ;;  %989 = vmatpush.bf16.msrb.mxu3 %v1619_v18  ;;  %v1723_v7 = vor.u32 %v1826_v4, %v1720_v5  ;;  %v1659_v12 = vor.u32 %v1810_v1, %v1656_v3  ;;  %v1770_v16 = vld [vmem:[%s2956_s1 + $0x20] sm:$0xf0]  ;;  %v1587_v18 = vor.u32 %v1792_v10, %v1584_v11  ;;  %v1576_v21 = vld [vmem:[%s2242_s15 + $0x8] sm:$0xf0]  ;;  %v1510_v24 = vld [vmem:[%s2956_s1 + $0x38] sm:$0xf]  ;;  %p2031_p12 = pnand %p2030_p6, %p2198_p9 }
  0x5d   : > { %847 = vmatpush.bf16.msra.mxu0 %v1575_v19  ;;  %v2422_v19 = vor.u32 %v1782_v14, %v1538_v13  ;;  %v1790_v20 = vld [vmem:[%s2242_s15 + $0x4] sm:$0xf]  ;;  %v2426_v22 = vor.u32 %v1770_v16, %v1490_v15  ;;  %v1789_v28 = vld [vmem:[%s2956_s1 + $0xb8] sm:$0xf0]  ;;  %v1808_v30 = vld [vmem:[%s2242_s15 + $0x94] sm:$0xf] }
  0x5e   : > { %868 = vmatmul.bf16.vlgmr.msra.gmra.mxu1 %v2349_v31  ;;  %432 = vperm.xlu2 %1904, %v394_v0   ;;  %v1774_v25 = vld [vmem:[%s2956_s1 + $0x40] sm:$0xf0]  ;;  %v1579_v29 = vor.u32 %v1790_v20, %v1576_v21  ;;  %v1648_v32 = vld [vmem:[%s2242_s15 + $0x98] sm:$0xf0]  ;;  %v1654_v33 = vld [vmem:[%s2242_s15 + $0xa0] sm:$0xf]  ;;  %p2032_p13 = pneg %p2031_p12 }
  0x5f   : > { %889 = vmatpush.bf16.msrb.mxu1 %v1695_v23  ;;  %v400_v23 = vld [vmem:[%s2957_s2 + $0x58] sm:$0xff]  ;;  %v401_v26 = vld [vmem:[%s2957_s2 + $0x60] sm:$0xff]  ;;  %v2451_v34 = vor.u32 %v1774_v25, %v1510_v24  ;;  %v1651_v36 = vor.u32 %v1808_v30, %v1648_v32  ;;  %v399_v1 = vld [vmem:[%s2957_s2 + $0x50] sm:$0xff] }
  0x60   : > { %848 = vmatmul.bf16.vlgmr.msra.gmra.mxu0 %v2356_v35  ;;  %1039 = vmatpush.bf16.msrb.mxu2 %v1675_v37  ;;  %v1811_v37 = vld [vmem:[%s2242_s15 + $0xa4] sm:$0xf0]  ;;  %v1824_v38 = vld [vmem:[%s2242_s15 + $0x114] sm:$0xf]  ;;  %v1712_v39 = vld [vmem:[%s2242_s15 + $0x118] sm:$0xf0] }
  0x61   : > { %1088 = vmatpush.bf16.msrb.mxu0 %v1739_v27  ;;  %990 = vmatpush.bf16.msrb.mxu3 %v1611_v42  ;;  %v1570_v27 = vld [vmem:[%s2956_s1 + $0xb0] sm:$0xf]  ;;  %v1715_v42 = vor.u32 %v1824_v38, %v1712_v39  ;;  %v404_v43 = vld [vmem:[%s2957_s2 + $0x78] sm:$0xff]  ;;  %v1806_v46 = vld [vmem:[%s2242_s15 + $0x84] sm:$0xf] }
  0x62   : > { %452 = vperm.xlu1 %1903, %v398_v58   ;;  %447 = vperm.xlu0 %1902, %v397_v63   ;;  %v2456_v40 = vor.u32 %v1789_v28, %v1570_v27  ;;  %v1809_v45 = vld [vmem:[%s2242_s15 + $0x94] sm:$0xf0]  ;;  %v1640_v48 = vld [vmem:[%s2242_s15 + $0x88] sm:$0xf0]  ;;  %v1638_v50 = vld [vmem:[%s2242_s15 + $0x80] sm:$0xf] }
  0x63   : > { %890 = vmatpush.bf16.msrb.mxu1 %v1687_v41  ;;  %1741 = vmatmul.msk.bf16.gmra.mxu2 %vm815_vm0, %v2379_v49  ;;  %v1655_v41 = vor.u32 %v1811_v37, %v1654_v33  ;;  %v1643_v51 = vor.u32 %v1806_v46, %v1640_v48  ;;  %v1785_v55 = vld [vmem:[%s2956_s1 + $0x98] sm:$0xf0]  ;;  %v1502_v58 = vld [vmem:[%s2956_s1 + $0x30] sm:$0xf]  ;;  %v1514_v8 = vld [vmem:[%s2956_s1 + $0x48] sm:$0xf] }
  0x64   : > { %1040 = vmatpush.bf16.msrb.mxu2 %v1667_v62  ;;  %v1773_v59 = vld [vmem:[%s2956_s1 + $0x38] sm:$0xf0]  ;;  %v1522_v63 = vld [vmem:[%s2956_s1 + $0x50] sm:$0xf]  ;;  %v1776_v9 = vld [vmem:[%s2956_s1 + $0x50] sm:$0xf0] }
  0x65   : > { %1089 = vmatpush.bf16.msrb.mxu0 %v1731_v44  ;;  %1746 = vmatmul.msk.bf16.gmra.mxu3 %vm815_vm0, %v2383_v52  ;;  %v1646_v44 = vld [vmem:[%s2242_s15 + $0x90] sm:$0xf]  ;;  %v1503_v62 = vor.u32 %v1773_v59, %v1502_v58  ;;  %v1777_v0 = vld [vmem:[%s2956_s1 + $0x58] sm:$0xf0]  ;;  %v1515_v11 = vor.u32 %v1776_v9, %v1514_v8  ;;  %v1766_v14 = vld [vmem:[%s2956_s1 + $0x4] sm:$0xf] }
  0x66   : > { %991 = vmatpush.bf16.msrb.mxu3 %v1603_v54  ;;  %467 = vperm.xlu2 %1904, %v401_v26   ;;  %v1647_v47 = vor.u32 %v1809_v45, %v1646_v44  ;;  %v1550_v54 = vld [vmem:[%s2956_s1 + $0x90] sm:$0xf]  ;;  %v1704_v3 = vld [vmem:[%s2242_s15 + $0x108] sm:$0xf0]  ;;  %v1523_v5 = vor.u32 %v1777_v0, %v1522_v63  ;;  %v1504_v21 = vld [vmem:[%s2956_s1 + $0x3c] sm:$0xf0] }
  0x67   : > { %891 = vmatpush.bf16.msrb.mxu1 %v1679_v53  ;;  %v1807_v53 = vld [vmem:[%s2242_s15 + $0x84] sm:$0xf0]  ;;  %v2483_v60 = vor.u32 %v1785_v55, %v1550_v54  ;;  %v1480_v15 = vld [vmem:[%s2956_s1 + $0xc] sm:$0xf0]  ;;  %v1781_v38 = vld [vmem:[%s2956_s1 + $0x7c] sm:$0xf] }
  0x68   : > { %1041 = vmatpush.bf16.msrb.mxu2 %v1659_v12  ;;  %v1639_v56 = vor.u32 %v1807_v53, %v1638_v50  ;;  %v1780_v12 = vld [vmem:[%s2956_s1 + $0x70] sm:$0xf0]  ;;  %v1483_v16 = vor.u32 %v1766_v14, %v1480_v15  ;;  %v1528_v27 = vld [vmem:[%s2956_s1 + $0x6c] sm:$0xf0]  ;;  %v1540_v39 = vld [vmem:[%s2956_s1 + $0x84] sm:$0xf0] }
  0x69   : > { %1090 = vmatpush.bf16.msrb.mxu0 %v1723_v7  ;;  %v1788_v7 = vld [vmem:[%s2956_s1 + $0xb0] sm:$0xf0]  ;;  %v1552_v53 = vld [vmem:[%s2956_s1 + $0x9c] sm:$0xf0]  ;;  %v1787_v0 = vld [vmem:[%s2956_s1 + $0xac] sm:$0xf] }
  0x6a   : > { %992 = vmatpush.bf16.msrb.mxu3 %v1595_v6  ;;  %462 = vperm.xlu0 %1902, %v400_v23   ;;  %v1562_v6 = vld [vmem:[%s2956_s1 + $0xa8] sm:$0xf]  ;;  %v1516_v23 = vld [vmem:[%s2956_s1 + $0x54] sm:$0xf0] }
  0x6b   : > { %892 = vmatpush.bf16.msrb.mxu1 %v1671_v2  ;;  %v1822_v2 = vld [vmem:[%s2242_s15 + $0x104] sm:$0xf]  ;;  %v2511_v10 = vor.u32 %v1788_v7, %v1562_v6 }
  0x6c   : > { %1042 = vmatpush.bf16.msrb.mxu2 %v1651_v36  ;;  %v1707_v4 = vor.u32 %v1822_v2, %v1704_v3 }
  0x6d   : > { %1091 = vmatpush.bf16.msrb.mxu0 %v1715_v42 }
  0x6e   : > { %993 = vmatpush.bf16.msrb.mxu3 %v1587_v18  ;;  %873 = vmatmul.bf16.gmra.mxu1 %v2422_v19  ;;  %v1492_v18 = vld [vmem:[%s2956_s1 + $0x24] sm:$0xf0] }
  0x6f   : > { %893 = vmatpush.bf16.msrb.mxu1 %v1663_v17  ;;  %482 = vperm.xlu2 %1904, %v404_v43   ;;  %v1769_v17 = vld [vmem:[%s2956_s1 + $0x1c] sm:$0xf] }
  0x70   : > { %853 = vmatmul.bf16.gmra.mxu0 %v2426_v22  ;;  %1043 = vmatpush.bf16.msrb.mxu2 %v1643_v51  ;;  %v1495_v20 = vor.u32 %v1769_v17, %v1492_v18  ;;  %v1784_v51 = vld [vmem:[%s2956_s1 + $0x94] sm:$0xf] }
  0x71   : > { %1092 = vmatpush.bf16.msrb.mxu0 %v1707_v4  ;;  %v1555_v54 = vor.u32 %v1784_v51, %v1552_v53 }
  0x72   : > { %994 = vmatpush.bf16.msrb.mxu3 %v1579_v29 }
  0x73   : > { %894 = vmatpush.bf16.msrb.mxu1 %v1655_v41  ;;  %1742 = vmatmul.msk.bf16.gmra.mxu2 %vm815_vm0, %v2451_v34  ;;  %v1543_v41 = vor.u32 %v1781_v38, %v1540_v39 }
  0x75   : > { %1747 = vmatmul.msk.bf16.gmra.mxu3 %vm815_vm0, %v2456_v40 }
  0x77   : > { %895 = vmatpush.bf16.msrb.mxu1 %v1647_v47  ;;  %457 = vperm.xlu2 %1904, %v399_v1   ;;  %v1564_v1 = vld [vmem:[%s2956_s1 + $0xb4] sm:$0xf0] }
  0x78   : > { %v1567_v2 = vor.u32 %v1787_v0, %v1564_v1 }
  0x7b   : > { %896 = vmatpush.bf16.msrb.mxu1 %v1639_v56 }
  0x7e   : > { %878 = vmatmul.bf16.gmra.mxu1 %v2483_v60 }
  0x80   : > { %858 = vmatmul.bf16.gmra.mxu0 %v1503_v62 }
  0x83   : > { %1743 = vmatmul.msk.bf16.gmra.mxu2 %vm815_vm0, %v1523_v5 }
  0x85   : > { %995 = vmatmul.bf16.vlgmr.msrb.gmra.mxu3 %v2356_v35  ;;  %v1534_v35 = vld [vmem:[%s2956_s1 + $0x68] sm:$0xf] }
  0x86   : > { %v1535_v13 = vor.u32 %v1780_v12, %v1534_v35 }
  0x8e   : > { %883 = vmatmul.bf16.gmra.mxu1 %v2511_v10 }
  0x90   : > { %863 = vmatmul.bf16.gmra.mxu0 %v1515_v11 }
  0x93   : > { %1744 = vmatmul.msk.bf16.gmra.mxu2 %vm815_vm0, %v1535_v13 }
  0x95   : > { %1000 = vmatmul.bf16.gmra.mxu3 %v2426_v22 }
  0x9e   : > { %897 = vmatmul.bf16.vlgmr.msrb.gmra.mxu1 %v1483_v16 }
  0xa0   : > { %1748 = vmatmul.msk.bf16.vlgmr.msrb.gmra.mxu0 %vm815_vm0, %v2300_v57  ;;  %v1772_v57 = vld [vmem:[%s2956_s1 + $0x34] sm:$0xf] }
  0xa1   : > { %v1507_v22 = vor.u32 %v1772_v57, %v1504_v21 }
  0xa3   : > { %1044 = vmatmul.bf16.vlgmr.msrb.gmra.mxu2 %v1483_v16 }
  0xa5   : > { %1005 = vmatmul.bf16.gmra.mxu3 %v1503_v62 }
  0xae   : > { %902 = vmatmul.bf16.gmra.mxu1 %v1495_v20 }
  0xb0   : > { %1749 = vmatmul.msk.bf16.gmra.mxu0 %vm815_vm0, %v2379_v49  ;;  %v1775_v49 = vld [vmem:[%s2956_s1 + $0x4c] sm:$0xf] }
  0xb1   : > { %v1519_v24 = vor.u32 %v1775_v49, %v1516_v23 }
  0xb3   : > { %1049 = vmatmul.bf16.gmra.mxu2 %v1495_v20 }
  0xb4   : > { %v408_v9 = vpop.permute.xlu0 %407  ;;  %v418_v23 = vpop.permute.xlu1 %417 }
  0xb5   : > { %1010 = vmatmul.bf16.gmra.mxu3 %v1515_v11 }
  0xbc   : > { %v413_v16 = vpop.permute.xlu0 %412  ;;  %v423_v53 = vpop.permute.xlu1 %422 }
  0xbe   : > { %907 = vmatmul.bf16.gmra.mxu1 %v1507_v22 }
  0xc0   : > { %1750 = vmatmul.msk.bf16.gmra.mxu0 %vm815_vm0, %v2451_v34 }
  0xc3   : > { %1054 = vmatmul.bf16.gmra.mxu2 %v1507_v22 }
  0xc5   : > { %1015 = vmatmul.bf16.gmra.mxu3 %v2349_v31  ;;  %v1778_v31 = vld [vmem:[%s2956_s1 + $0x64] sm:$0xf] }
  0xc6   : > { %v1531_v28 = vor.u32 %v1778_v31, %v1528_v27 }
  0xce   : > { %912 = vmatmul.bf16.gmra.mxu1 %v1519_v24 }
  0xd0   : > { %1751 = vmatmul.msk.bf16.gmra.mxu0 %vm815_vm0, %v1523_v5 }
  0xd3   : > { %1059 = vmatmul.bf16.gmra.mxu2 %v1519_v24 }
  0xd5   : > { %1020 = vmatmul.bf16.gmra.mxu3 %v2422_v19 }
  0xd6   : > { %v2555_v25 = vpop.f32.mrf.mxu2 }
  0xd8   : > { %v2557_v26 = vpop.f32.mrf.mxu3 }
  0xdb   : > { %v2565_v29 = vpop.f32.mrf.mxu1 }
  0xdd   : > { %v849_v30 = vpop.f32.mrf.mxu0 }
  0xde   : > { %v2567_v32 = vpop.f32.mrf.mxu2  ;;  %917 = vmatmul.bf16.gmra.mxu1 %v1531_v28  ;;  %v850_v11 = vadd.f32 %v849_v30, %v408_v9 }
  0xe0   : > { %v2569_v19 = vpop.f32.mrf.mxu3  ;;  %1752 = vmatmul.msk.bf16.gmra.mxu0 %vm815_vm0, %v1535_v13 }
  0xe1   : > { %2968 = vst [vmem:[#allocation14_spill] sm:$0xff] %v2569_v19 }
  0xe3   : > { %1064 = vmatmul.bf16.gmra.mxu2 %v1531_v28  ;;  %v2572_v33 = vpop.f32.mrf.mxu1 }
  0xe5   : > { %1025 = vmatmul.bf16.gmra.mxu3 %v2483_v60  ;;  %v851_v34 = vpop.f32.mrf.mxu0 }
  0xe6   : > { %v2575_v36 = vpop.f32.mrf.mxu2 }
  0xe8   : > { %v2577_v37 = vpop.f32.mrf.mxu3 }
  0xeb   : > { %v2585_v42 = vpop.f32.mrf.mxu1 }
  0xed   : > { %v854_v43 = vpop.f32.mrf.mxu0 }
  0xee   : > { %v2587_v44 = vpop.f32.mrf.mxu2  ;;  %922 = vmatmul.bf16.gmra.mxu1 %v1543_v41  ;;  %v855_v27 = vadd.f32 %v854_v43, %v418_v23 }
  0xf0   : > { %v2589_v45 = vpop.f32.mrf.mxu3  ;;  %1753 = vmatmul.msk.bf16.gmra.mxu0 %vm815_vm0, %v2304_v61 }
  0xf3   : > { %1069 = vmatmul.bf16.gmra.mxu2 %v1543_v41  ;;  %v2593_v46 = vpop.f32.mrf.mxu1 }
  0xf5   : > { %1030 = vmatmul.bf16.gmra.mxu3 %v2511_v10  ;;  %v856_v47 = vpop.f32.mrf.mxu0 }
  0xf6   : > { %v2596_v48 = vpop.f32.mrf.mxu2 }
  0xf8   : > { %v2598_v50 = vpop.f32.mrf.mxu3 }
  0xfb   : > { %v2606_v61 = vpop.f32.mrf.mxu1 }
  0xfd   : > { %v2608_v55 = vpop.f32.mrf.mxu0 }
  0xfe   : > { %v2610_v56 = vpop.f32.mrf.mxu2  ;;  %927 = vmatmul.bf16.gmra.mxu1 %v1555_v54 }
 0x100   : > { %v2612_v58 = vpop.f32.mrf.mxu3  ;;  %1754 = vmatmul.msk.bf16.gmra.mxu0 %vm815_vm0, %v2383_v52 }
 0x101   : > { %2969 = vst [vmem:[#allocation15_spill] sm:$0xff] %v2612_v58 }
 0x103   : > { %1074 = vmatmul.bf16.gmra.mxu2 %v1555_v54  ;;  %v2616_v59 = vpop.f32.mrf.mxu1  ;;  %v857_v54 = vadd.f32 %v856_v47, %v423_v53 }
 0x105   : > { %v2618_v60 = vpop.f32.mrf.mxu0 }
 0x106   : > { %v2620_v62 = vpop.f32.mrf.mxu2 }
 0x108   : > { %v996_v63 = vpop.f32.mrf.mxu3 }
 0x109   : > { %v997_v18 = vadd.f32 %v996_v63, %v408_v9 }
 0x10b   : > { %v2628_v3 = vpop.f32.mrf.mxu1 }
 0x10d   : > { %v2630_v52 = vpop.f32.mrf.mxu0 }
 0x10e   : > { %v2632_v4 = vpop.f32.mrf.mxu2  ;;  %932 = vmatmul.bf16.gmra.mxu1 %v1567_v2 }
 0x110   : > { %v998_v5 = vpop.f32.mrf.mxu3  ;;  %1755 = vmatmul.msk.bf16.gmra.mxu0 %vm815_vm0, %v2456_v40  ;;  %v852_v40 = vadd.f32 %v851_v34, %v413_v16 }
 0x111   : > { %v999_v34 = vadd.f32 %v998_v5, %v413_v16  ;;  %v2664_v5 = vpop.permute.xlu2 %427 }
 0x113   : > { %1079 = vmatmul.bf16.gmra.mxu2 %v1567_v2  ;;  %v2636_v6 = vpop.f32.mrf.mxu1 }
 0x115   : > { %v2638_v7 = vpop.f32.mrf.mxu0 }
 0x116   : > { %v2640_v8 = vpop.f32.mrf.mxu2 }
 0x118   : > { %v1001_v10 = vpop.f32.mrf.mxu3 }
 0x119   : > { %v1002_v63 = vadd.f32 %v1001_v10, %v418_v23  ;;  %v2681_v23 = vpop.permute.xlu0 %437 }
 0x11b   : > { %v898_v35 = vpop.f32.mrf.mxu1 }
 0x11c   : > { %v899_v12 = vadd.f32 %v898_v35, %v850_v11 }
 0x11d   : > { %v1094_v13 = vpop.f32.mrf.mxu0 }
 0x11e   : > { %v2643_v14 = vadd.f32 %v2555_v25, %v899_v12  ;;  %v2645_v15 = vpop.f32.mrf.mxu2  ;;  %v860_v12 = vadd.f32 %v2608_v55, %v2664_v5 }
 0x120   : > { %v1003_v17 = vpop.f32.mrf.mxu3 }
 0x121   : > { %v1004_v16 = vadd.f32 %v1003_v17, %v423_v53 }
 0x123   : > { %v900_v20 = vpop.f32.mrf.mxu1 }
 0x124   : > { %v901_v57 = vadd.f32 %v900_v20, %v852_v40 }
 0x125   : > { %v1096_v21 = vpop.f32.mrf.mxu0 }
 0x126   : > { %v2648_v22 = vadd.f32 %v2567_v32, %v901_v57  ;;  %v1045_v49 = vpop.f32.mrf.mxu2  ;;  %v2675_v57 = vpop.permute.xlu2 %432 }
 0x127   : > { %v1046_v24 = vadd.f32 %v1045_v49, %v997_v18  ;;  %v862_v49 = vadd.f32 %v2618_v60, %v2675_v57  ;;  %v2694_v60 = vpop.permute.xlu0 %472 }
 0x128   : > { %v2652_v28 = vpop.f32.mrf.mxu3 }
 0x129   : > { %v2650_v31 = vadd.f32 %v1094_v13, %v1046_v24 }
 0x12b   : > { %v903_v25 = vpop.f32.mrf.mxu1 }
 0x12c   : > { %v904_v30 = vadd.f32 %v903_v25, %v855_v27  ;;  %v865_v25 = vadd.f32 %v2630_v52, %v2681_v23 }
 0x12d   : > { %v1099_v38 = vpop.f32.mrf.mxu0 }
 0x12e   : > { %v2655_v39 = vadd.f32 %v2575_v36, %v904_v30  ;;  %v1047_v41 = vpop.f32.mrf.mxu2 }
 0x12f   : > { %v1048_v51 = vadd.f32 %v1047_v41, %v999_v34 }
 0x130   : > { %v2659_v43 = vpop.f32.mrf.mxu3  ;;  %v1138_v58 = vmul.f32 0.5, %v2655_v39 }
 0x131   : > { %v2657_v32 = vadd.f32 %v1096_v21, %v1048_v51 }
 0x133   : > { %v905_v0 = vpop.f32.mrf.mxu1 }
 0x134   : > { %v906_v1 = vadd.f32 %v905_v0, %v857_v54 }
 0x135   : > { %v1101_v2 = vpop.f32.mrf.mxu0 }
 0x136   : > { %v2662_v9 = vadd.f32 %v2587_v44, %v906_v1  ;;  %v1050_v11 = vpop.f32.mrf.mxu2 }
 0x137   : > { %v1051_v36 = vadd.f32 %v1050_v11, %v1002_v63 }
 0x138   : > { %v2673_v44 = vpop.f32.mrf.mxu3 }
 0x139   : > { %v2666_v35 = vadd.f32 %v1099_v38, %v1051_v36  ;;  %v2690_v38 = vpop.permute.xlu1 %442 }
 0x13b   : > { %v908_v13 = vpop.f32.mrf.mxu1 }
 0x13c   : > { %v909_v47 = vadd.f32 %v908_v13, %v860_v12  ;;  %v2712_v12 = vpop.permute.xlu0 %447 }
 0x13d   : > { %v2670_v10 = vpop.f32.mrf.mxu0 }
 0x13e   : > { %v958_v40 = vadd.f32 %v2596_v48, %v909_v47  ;;  %v1052_v18 = vpop.f32.mrf.mxu2 }
 0x13f   : > { %v1053_v20 = vadd.f32 %v1052_v18, %v1004_v16 }
 0x140   : > { %v2688_v30 = vpop.f32.mrf.mxu3 }
 0x141   : > { %v2677_v21 = vadd.f32 %v1101_v2, %v1053_v20  ;;  %v2705_v2 = vpop.permute.xlu1 %477 }
 0x143   : > { %v910_v55 = vpop.f32.mrf.mxu1 }
 0x144   : > { %v911_v24 = vadd.f32 %v910_v55, %v862_v49 }
 0x145   : > { %v2683_v27 = vpop.f32.mrf.mxu0 }
 0x146   : > { %v960_v17 = vadd.f32 %v2610_v56, %v911_v24  ;;  %v1055_v48 = vpop.f32.mrf.mxu2  ;;  %v867_v56 = vadd.f32 %v2638_v7, %v2690_v38 }
 0x148   : > { %v2701_v0 = vpop.f32.mrf.mxu3 }
 0x14b   : > { %v913_v34 = vpop.f32.mrf.mxu1 }
 0x14c   : > { %v914_v41 = vadd.f32 %v913_v34, %v865_v25 }
 0x14d   : > { %v2692_v51 = vpop.f32.mrf.mxu0 }
 0x14e   : > { %v2697_v53 = vadd.f32 %v2620_v62, %v914_v41  ;;  %v1057_v54 = vpop.f32.mrf.mxu2  ;;  %v870_v62 = vadd.f32 %v2565_v29, %v2712_v12  ;;  %v2731_v29 = vpop.permute.xlu2 %467 }
 0x150   : > { %v2718_v16 = vpop.f32.mrf.mxu3 }
 0x153   : > { %v915_v63 = vpop.f32.mrf.mxu1 }
 0x154   : > { %v916_v52 = vadd.f32 %v915_v63, %v867_v56  ;;  %v1134_v63 = vmul.f32 0.5, %v2643_v14 }
 0x155   : > { %v2703_v1 = vpop.f32.mrf.mxu0 }
 0x156   : > { %v2708_v11 = vadd.f32 %v2632_v4, %v916_v52  ;;  %v2710_v36 = vpop.f32.mrf.mxu2  ;;  %v2725_v4 = vpop.permute.xlu1 %452  ;;  %v1136_v52 = vmul.f32 0.5, %v2648_v22  ;;  %1905 = vtanh.f32 %v1134_v63  ;;  %v1168_v22 = vmul.f32 0.5, %v960_v17 }
 0x157   : > { %v872_v49 = vadd.f32 %v2572_v33, %v2725_v4  ;;  %v1009_v17 = vadd.f32 %v2659_v43, %v2675_v57 }
 0x158   : > { %1907 = vtanh.f32 %v1136_v52  ;;  %v2765_v52 = vpop.permute.xlu0 %462 }
 0x159   : > { %v2778_v43 = vadd.f32 %v2593_v46, %v2765_v52 }
 0x15b   : > { %v918_v13 = vpop.f32.mrf.mxu1 }
 0x15c   : > { %v919_v7 = vadd.f32 %v918_v13, %v870_v62  ;;  %v2748_v13 = vpop.permute.xlu2 %482  ;;  %v1906_v19 = vpop.eup %1905 }
 0x15d   : > { %v2716_v47 = vpop.f32.mrf.mxu0 }
 0x15e   : > { %v2721_v18 = vadd.f32 %v2640_v8, %v919_v7  ;;  %v2723_v20 = vpop.f32.mrf.mxu2  ;;  %v2738_v8 = vpop.f32.mrf.mxu3  ;;  %v1135_v7 = vmul.f32 0.5, %v2650_v31  ;;  %v1137_v31 = vmul.f32 0.5, %v2657_v32  ;;  %v1140_v32 = vmul.f32 0.5, %v2662_v9 }
 0x160   : > { %1909 = vtanh.f32 %v1135_v7  ;;  %v880_v7 = vadd.f32 %v2606_v61, %v2731_v29 }
 0x163   : > { %v920_v55 = vpop.f32.mrf.mxu1 }
 0x164   : > { %v921_v24 = vadd.f32 %v920_v55, %v872_v49  ;;  %v1007_v49 = vadd.f32 %v2652_v28, %v2664_v5  ;;  %v2763_v5 = vpop.permute.xlu2 %457 }
 0x165   : > { %v2729_v25 = vpop.f32.mrf.mxu0 }
 0x166   : > { %v2734_v34 = vadd.f32 %v2645_v15, %v921_v24  ;;  %v2736_v41 = vpop.f32.mrf.mxu2  ;;  %v1166_v15 = vmul.f32 0.5, %v958_v40  ;;  %v2753_v55 = vpop.f32.mrf.mxu3  ;;  %v1056_v24 = vadd.f32 %v1055_v48, %v1007_v49  ;;  %v1058_v49 = vadd.f32 %v1057_v54, %v1009_v17 }
 0x167   : > { %2971 = vst [vmem:[#allocation17_spill] sm:$0xff] %v2753_v55  ;;  %v1908_v40 = vpop.eup %1907  ;;  %v875_v55 = vadd.f32 %v2585_v42, %v2763_v5  ;;  %v1170_v54 = vmul.f32 0.5, %v2697_v53  ;;  %v2802_v17 = vadd.f32 %v2636_v6, %v2748_v13 }
 0x168   : > { %1911 = vtanh.f32 %v1166_v15  ;;  %v1910_v28 = vpop.eup %1909  ;;  %v1105_v39 = vadd.f32 %v2670_v10, %v1056_v24  ;;  %v1139_v15 = vmul.f32 0.5, %v2666_v35  ;;  %v1150_v10 = vmul.f32 0.5, %v1906_v19 }
 0x169   : > { %1913 = vtanh.f32 %v1168_v22  ;;  %v1151_v22 = vmul.f32 0.5, %v1910_v28  ;;  %v1012_v35 = vadd.f32 %v2673_v44, %v2681_v23  ;;  %v1017_v19 = vadd.f32 %v2701_v0, %v2712_v12 }
 0x16a   : > { %1915 = vtanh.f32 %v1138_v58  ;;  %v1152_v58 = vmul.f32 0.5, %v1908_v40  ;;  %v1167_v24 = vmul.f32 0.5, %v1105_v39  ;;  %v1107_v40 = vadd.f32 %v2683_v27, %v1058_v49 }
 0x16b   : > { %v2740_v56 = vpop.f32.mrf.mxu1  ;;  %1917 = vtanh.f32 %v1137_v31  ;;  %v882_v44 = vadd.f32 %v2616_v59, %v2694_v60  ;;  %v2797_v23 = vadd.f32 %v2628_v3, %v2705_v2  ;;  %v1158_v0 = vadd.f32 0.5, %v1150_v10  ;;  %v1238_v59 = vld [vmem:[%s2807_s7] sm:$0xff] }
 0x16c   : > { %1919 = vtanh.f32 %v1140_v32  ;;  %v2804_v12 = vadd.f32 0.5, %v1152_v58  ;;  %v1061_v3 = vadd.f32 %v2710_v36, %v1012_v35  ;;  %v2811_v39 = vadd.f32 0.5, %v1151_v22 }
 0x16d   : > { %v2746_v62 = vpop.f32.mrf.mxu0  ;;  %1921 = vtanh.f32 %v1139_v15  ;;  %v1066_v6 = vadd.f32 %v2736_v41, %v1017_v19  ;;  %v924_v22 = vadd.f32 %v2740_v56, %v875_v55  ;;  %v1240_v55 = vld [vmem:[%s2807_s7 + $0x10] sm:$0xff] }
 0x16e   : > { %v2744_v33 = vpop.f32.mrf.mxu2  ;;  %2970 = vst [vmem:[#allocation16_spill] sm:$0xff] %v2746_v62  ;;  %v1912_v48 = vpop.eup %1911  ;;  %v1110_v41 = vadd.f32 %v2692_v51, %v1061_v3  ;;  %v1019_v51 = vadd.f32 %v2718_v16, %v2725_v4 }
 0x16f   : > { %v1026_v57 = vpop.f32.mrf.mxu3  ;;  %v1182_v9 = vmul.f32 0.5, %v1912_v48  ;;  %v1914_v46 = vpop.eup %1913  ;;  %v1169_v48 = vmul.f32 0.5, %v1107_v40 }
 0x170   : > { %v1916_v28 = vpop.eup %1915  ;;  %v1027_v36 = vadd.f32 %v1026_v57, %v2731_v29 }
 0x171   : > { %v1918_v53 = vpop.eup %1917  ;;  %v1190_v27 = vadd.f32 0.5, %v1182_v9  ;;  %v1154_v15 = vmul.f32 0.5, %v1916_v28  ;;  %v1172_v9 = vmul.f32 0.5, %v2708_v11 }
 0x172   : > { %v2814_v32 = vpop.eup %1919  ;;  %v1153_v49 = vmul.f32 0.5, %v1918_v53  ;;  %v1014_v53 = vadd.f32 %v2688_v30, %v2690_v38  ;;  %v1022_v38 = vadd.f32 %v2738_v8, %v2763_v5 }
 0x173   : > { %v2755_v14 = vpop.f32.mrf.mxu1  ;;  %v1246_v58 = vmul.f32 %v1238_v59, %v1190_v27  ;;  %v2825_v57 = vadd.f32 0.5, %v1154_v15  ;;  %v1068_v27 = vadd.f32 %v2744_v33, %v1019_v51 }
 0x174   : > { %v2827_v56 = vadd.f32 0.5, %v1153_v49  ;;  %v1063_v33 = vadd.f32 %v2723_v20, %v1014_v53 }
 0x175   : > { %v2761_v63 = vpop.f32.mrf.mxu0  ;;  %v1117_v49 = vadd.f32 %v2729_v25, %v1068_v27  ;;  %v2974_v27 = vld [vmem:[#allocation16_spill] sm:$0xff] }
 0x176   : > { %v2758_v62 = vpop.f32.mrf.mxu2  ;;  %2972 = vst [vmem:[#allocation18_spill] sm:$0xff] %v2761_v63 }
 0x17b   : > { %v928_v63 = vpop.f32.mrf.mxu1 }
 0x17c   : > { %v929_v61 = vadd.f32 %v928_v63, %v880_v7  ;;  %v1198_v63 = vmul.f32 0.5, %v2721_v18  ;;  %v1184_v18 = vmul.f32 0.5, %v1914_v46 }
 0x17e   : > { %v978_v42 = vadd.f32 %v2577_v37, %v929_v61  ;;  %v2787_v31 = vpop.f32.mrf.mxu2  ;;  %v1141_v37 = vmul.f32 0.5, %v2677_v21  ;;  %v1124_v21 = vpop.f32.mrf.mxu0  ;;  %v1192_v35 = vadd.f32 0.5, %v1184_v18 }
 0x17f   : > { %v2816_v61 = vpop.eup %1921 }
 0x180   : > { %1923 = vtanh.f32 %v978_v42  ;;  %v1028_v42 = vpop.f32.mrf.mxu3  ;;  %v1248_v59 = vmul.f32 %v1240_v55, %v1192_v35 }
 0x181   : > { %1925 = vtanh.f32 %v1167_v24 }
 0x182   : > { %1927 = vtanh.f32 %v1170_v54  ;;  %v1200_v54 = vmul.f32 0.5, %v2734_v34 }
 0x183   : > { %1929 = vtanh.f32 %v1198_v63  ;;  %v930_v7 = vpop.f32.mrf.mxu1  ;;  %v1115_v63 = vadd.f32 %v2716_v47, %v1066_v6 }
 0x184   : > { %1931 = vtanh.f32 %v1141_v37  ;;  %v931_v10 = vadd.f32 %v930_v7, %v882_v44  ;;  %v1029_v7 = vadd.f32 %v1028_v42, %v2694_v60  ;;  %v2853_v60 = vmul.f32 0.5, %v2814_v32 }
 0x185   : > { %1933 = vtanh.f32 %v1169_v48  ;;  %v1199_v16 = vmul.f32 0.5, %v1115_v63  ;;  %v1201_v42 = vmul.f32 0.5, %v1117_v49  ;;  %v1071_v32 = vadd.f32 %v2758_v62, %v1022_v38 }
 0x186   : > { %v1924_v24 = vpop.eup %1923  ;;  %v980_v46 = vadd.f32 %v2589_v45, %v931_v10  ;;  %v1075_v19 = vpop.f32.mrf.mxu2  ;;  %v973_v45 = vadd.f32 %v2557_v26, %v924_v22  ;;  %v926_v10 = vadd.f32 %v2755_v14, %v2778_v43  ;;  %v1239_v22 = vld [vmem:[%s2807_s7 + $0x8] sm:$0xff]  ;;  %v1242_v43 = vld [vmem:[%s2807_s7 + $0x20] sm:$0xff] }
 0x187   : > { %v1926_v40 = vpop.eup %1925  ;;  %v1254_v11 = vmul.f32 %v1924_v24, %v1158_v0  ;;  %v1076_v28 = vadd.f32 %v1075_v19, %v1027_v36  ;;  %v1171_v0 = vmul.f32 0.5, %v1110_v41 }
 0x188   : > { %v1928_v29 = vpop.eup %1927  ;;  %1935 = vtanh.f32 %v980_v46  ;;  %v1183_v18 = vmul.f32 0.5, %v1926_v40  ;;  %v1202_v6 = vmul.f32 0.5, %v973_v45  ;;  %v1031_v35 = vpop.f32.mrf.mxu3  ;;  %v2973_v46 = vld [vmem:[#allocation14_spill] sm:$0xff] }
 0x189   : > { %v1930_v34 = vpop.eup %1929  ;;  %1937 = vtanh.f32 %v1172_v9  ;;  %v1262_v44 = vadd.f32 %v1254_v11, %v1246_v58  ;;  %v1125_v37 = vadd.f32 %v1124_v21, %v1076_v28  ;;  %v1186_v4 = vmul.f32 0.5, %v1928_v29  ;;  %v1126_v21 = vpop.f32.mrf.mxu0 }
 0x18a   : > { %v2833_v47 = vpop.eup %1931  ;;  %1939 = vtanh.f32 %v1200_v54  ;;  %v1214_v3 = vmul.f32 0.5, %v1930_v34  ;;  %v1191_v36 = vadd.f32 0.5, %v1183_v18  ;;  %v975_v19 = vadd.f32 %v2973_v46, %v926_v10 }
 0x18b   : > { %1941 = vtanh.f32 %v1262_v44  ;;  %1294 = vst [vmem:[%s2839_s13] sm:$0xff] %v1262_v44  ;;  %v933_v26 = vpop.f32.mrf.mxu1  ;;  %v1934_v30 = vpop.eup %1933  ;;  %v1194_v24 = vadd.f32 0.5, %v1186_v4 }
 0x18c   : > { %1943 = vtanh.f32 %v1125_v37  ;;  %v934_v48 = vadd.f32 %v933_v26, %v2797_v23  ;;  %v1222_v25 = vadd.f32 0.5, %v1214_v3  ;;  %v1247_v63 = vmul.f32 %v1239_v22, %v1191_v36 }
 0x18d   : > { %1945 = vtanh.f32 %v1171_v0  ;;  %v1185_v11 = vmul.f32 0.5, %v1934_v30  ;;  %v1032_v37 = vadd.f32 %v1031_v35, %v2705_v2  ;;  %v1204_v0 = vmul.f32 0.5, %v975_v19  ;;  %v1241_v30 = vld [vmem:[%s2807_s7 + $0x18] sm:$0xff] }
 0x18e   : > { %v1936_v15 = vpop.eup %1935  ;;  %v983_v23 = vadd.f32 %v2598_v50, %v934_v48  ;;  %v1077_v58 = vpop.f32.mrf.mxu2  ;;  %1947 = vtanh.f32 %v1199_v16  ;;  %v1112_v50 = vadd.f32 %v2703_v1, %v1063_v33  ;;  %v1250_v1 = vmul.f32 %v1242_v43, %v1194_v24  ;;  %v2975_v16 = vld [vmem:[#allocation15_spill] sm:$0xff]  ;;  %v2976_v2 = vld [vmem:[#allocation17_spill] sm:$0xff] }
 0x18f   : > { %v1938_v9 = vpop.eup %1937  ;;  %v1256_v20 = vmul.f32 %v1936_v15, %v2804_v12  ;;  %v1078_v8 = vadd.f32 %v1077_v58, %v1029_v7  ;;  %v1024_v38 = vadd.f32 %v2976_v2, %v2765_v52  ;;  %v1244_v52 = vld [vmem:[%s2807_s7 + $0x30] sm:$0xff] }
 0x190   : > { %v1940_v5 = vpop.eup %1939  ;;  %1949 = vtanh.f32 %v983_v23  ;;  %v1188_v45 = vmul.f32 0.5, %v1938_v9  ;;  %v1173_v44 = vmul.f32 0.5, %v1112_v50  ;;  %v1033_v9 = vpop.f32.mrf.mxu3 }
 0x191   : > { %v1942_v14 = vpop.eup %1941  ;;  %1951 = vtanh.f32 %v1202_v6  ;;  %v1264_v41 = vadd.f32 %v1256_v20, %v1248_v59  ;;  %v1127_v54 = vadd.f32 %v1126_v21, %v1078_v8  ;;  %v1216_v51 = vmul.f32 0.5, %v1940_v5  ;;  %v1129_v18 = vpop.f32.mrf.mxu0 }
 0x192   : > { %v1944_v12 = vpop.eup %1943  ;;  %v1278_v40 = vmul.f32 %v1942_v14, %v1222_v25  ;;  %v1120_v59 = vadd.f32 %v2974_v27, %v1071_v32  ;;  %v1193_v21 = vadd.f32 0.5, %v1185_v11  ;;  %v1196_v15 = vadd.f32 0.5, %v1188_v45 }
 0x193   : > { %1953 = vtanh.f32 %v1264_v41  ;;  %1296 = vst [vmem:[%s2839_s13 + $0x10] sm:$0xff] %v1264_v41  ;;  %v1255_v28 = vmul.f32 %v1944_v12, %v2811_v39  ;;  %v935_v29 = vpop.f32.mrf.mxu1  ;;  %v1946_v55 = vpop.eup %1945  ;;  %v1224_v33 = vadd.f32 0.5, %v1216_v51  ;;  %v1164_v14 = vadd.f32 0.5, %v2853_v60 }
 0x194   : > { %1286 = vst [vmem:[%s2863_s29] sm:$0xff] %v1278_v40  ;;  %1955 = vtanh.f32 %v1127_v54  ;;  %v936_v34 = vadd.f32 %v935_v29, %v2802_v17  ;;  %v1948_v62 = vpop.eup %1947  ;;  %v1203_v58 = vmul.f32 0.5, %v1120_v59  ;;  %v1249_v20 = vmul.f32 %v1241_v30, %v1193_v21 }
 0x195   : > { %v1263_v53 = vadd.f32 %v1255_v28, %v1247_v63  ;;  %1957 = vtanh.f32 %v1201_v42  ;;  %v1215_v6 = vmul.f32 0.5, %v1948_v62  ;;  %v1187_v8 = vmul.f32 0.5, %v1946_v55 }
 0x196   : > { %v1950_v39 = vpop.eup %1949  ;;  %v985_v26 = vadd.f32 %v2975_v16, %v936_v34  ;;  %v1080_v4 = vpop.f32.mrf.mxu2  ;;  %v1034_v43 = vadd.f32 %v1033_v9, %v2748_v13  ;;  %v1252_v54 = vmul.f32 %v1244_v52, %v1196_v15 }
 0x197   : > { %v1952_v3 = vpop.eup %1951  ;;  %1959 = vtanh.f32 %v1263_v53  ;;  %1295 = vst [vmem:[%s2839_s13 + $0x8] sm:$0xff] %v1263_v53  ;;  %v1258_v17 = vmul.f32 %v1950_v39, %v2825_v57  ;;  %v1081_v48 = vadd.f32 %v1080_v4, %v1032_v37  ;;  %v1073_v57 = vadd.f32 %v2787_v31, %v1024_v38 }
 0x198   : > { %1961 = vtanh.f32 %v985_v26  ;;  %v1223_v24 = vadd.f32 0.5, %v1215_v6  ;;  %v1218_v25 = vmul.f32 0.5, %v1952_v3  ;;  %v1155_v31 = vmul.f32 0.5, %v2816_v61  ;;  %v1243_v61 = vld [vmem:[%s2807_s7 + $0x28] sm:$0xff]  ;;  %v1245_v3 = vld [vmem:[%s2807_s7 + $0x38] sm:$0xff]  ;;  %s2033_s7 = scalar_lea.hbm %s2960_s5, 128 }
 0x199   : > { %v1954_v7 = vpop.eup %1953  ;;  %1963 = vtanh.f32 %v1173_v44  ;;  %v1266_v49 = vadd.f32 %v1258_v17, %v1250_v1  ;;  %v1130_v10 = vadd.f32 %v1129_v18, %v1081_v48  ;;  %v1195_v32 = vadd.f32 0.5, %v1187_v8  ;;  %v1131_v28 = vpop.f32.mrf.mxu0  ;;  %p2035_p1 = scmp.lt.s32.totalorder %s2033_s7, %s2029_s20 }
 0x19a   : > { %v1956_v23 = vpop.eup %1955  ;;  %1965 = vtanh.f32 %v1204_v0  ;;  %v1280_v36 = vmul.f32 %v1954_v7, %v1224_v33  ;;  %v1226_v11 = vadd.f32 0.5, %v1218_v25  ;;  %v1163_v55 = vadd.f32 0.5, %v1155_v31 }
 0x19b   : > { %1967 = vtanh.f32 %v1266_v49  ;;  %1298 = vst [vmem:[%s2839_s13 + $0x20] sm:$0xff] %v1266_v49  ;;  %v1257_v5 = vmul.f32 %v1956_v23, %v2827_v56  ;;  %v1958_v22 = vpop.eup %1957  ;;  %v2977_v56 = vld [vmem:[#allocation18_spill] sm:$0xff]  ;;  %v1251_v44 = vmul.f32 %v1243_v61, %v1195_v32  ;;  %v1157_v18 = vmul.f32 0.5, %v2833_v47  ;;  %p2036_p2 = por %p2035_p1, %p2034_p0 }
 0x19c   : > { %1288 = vst [vmem:[%s2863_s29 + $0x10] sm:$0xff] %v1280_v36  ;;  %1969 = vtanh.f32 %v1130_v10  ;;  %v1122_v12 = vadd.f32 %v2977_v56, %v1073_v57  ;;  %v1217_v13 = vmul.f32 0.5, %v1958_v22 }
 0x19d   : > { %v1960_v35 = vpop.eup %1959  ;;  %v1265_v50 = vadd.f32 %v1257_v5, %v1249_v20  ;;  %1971 = vtanh.f32 %v1203_v58  ;;  %v1165_v47 = vadd.f32 0.5, %v1157_v18  ;;  %p2037_p3 = pnand %p2036_p2, %p2032_p13 }
 0x19e   : > { %v1962_v41 = vpop.eup %1961  ;;  %v1279_v42 = vmul.f32 %v1960_v35, %v1223_v24  ;;  %v1082_v46 = vpop.f32.mrf.mxu2  ;;  %v1205_v62 = vmul.f32 0.5, %v1122_v12  ;;  %v1225_v0 = vadd.f32 0.5, %v1217_v13 }
 0x19f   : > { %v1964_v19 = vpop.eup %1963  ;;  %1973 = vtanh.f32 %v1265_v50  ;;  %1297 = vst [vmem:[%s2839_s13 + $0x18] sm:$0xff] %v1265_v50  ;;  %v1260_v40 = vmul.f32 %v1962_v41, %v1164_v14  ;;  %v1083_v60 = vadd.f32 %v1082_v46, %v1034_v43 }
 0x1a0   : > { %v1966_v63 = vpop.eup %1965  ;;  %1287 = vst [vmem:[%s2863_s29 + $0x8] sm:$0xff] %v1279_v42  ;;  %v1189_v37 = vmul.f32 0.5, %v1964_v19 }
 0x1a1   : > { %v1968_v29 = vpop.eup %1967  ;;  %v1268_v1 = vadd.f32 %v1260_v40, %v1252_v54  ;;  %v1132_v51 = vadd.f32 %v1131_v28, %v1083_v60  ;;  %v1220_v27 = vmul.f32 0.5, %v1966_v63 }
 0x1a2   : > { %v1970_v34 = vpop.eup %1969  ;;  %v1282_v45 = vmul.f32 %v1968_v29, %v1226_v11  ;;  %v1197_v4 = vadd.f32 0.5, %v1189_v37 }
 0x1a3   : > { %1975 = vtanh.f32 %v1268_v1  ;;  %1300 = vst [vmem:[%s2839_s13 + $0x30] sm:$0xff] %v1268_v1  ;;  %v1259_v53 = vmul.f32 %v1970_v34, %v1163_v55  ;;  %v1972_v39 = vpop.eup %1971  ;;  %v1228_v21 = vadd.f32 0.5, %v1220_v27 }
 0x1a4   : > { %1290 = vst [vmem:[%s2863_s29 + $0x20] sm:$0xff] %v1282_v45  ;;  %1977 = vtanh.f32 %v1132_v51  ;;  %v1219_v17 = vmul.f32 0.5, %v1972_v39  ;;  %v1253_v38 = vmul.f32 %v1245_v3, %v1197_v4 }
 0x1a5   : > { %v1974_v59 = vpop.eup %1973  ;;  %v1267_v16 = vadd.f32 %v1259_v53, %v1251_v44  ;;  %1979 = vtanh.f32 %v1205_v62 }
 0x1a6   : > { %v1281_v26 = vmul.f32 %v1974_v59, %v1225_v0  ;;  %v1227_v7 = vadd.f32 0.5, %v1219_v17 }
 0x1a7   : > { %1981 = vtanh.f32 %v1267_v16  ;;  %1299 = vst [vmem:[%s2839_s13 + $0x28] sm:$0xff] %v1267_v16 }
 0x1a8   : > { %1289 = vst [vmem:[%s2863_s29 + $0x18] sm:$0xff] %v1281_v26 }
 0x1a9   : > { %v1976_v48 = vpop.eup %1975 }
 0x1aa   : > { %v1978_v30 = vpop.eup %1977  ;;  %v1284_v2 = vmul.f32 %v1976_v48, %v1228_v21 }
 0x1ab   : > { %v1261_v33 = vmul.f32 %v1978_v30, %v1165_v47  ;;  %v1980_v6 = vpop.eup %1979 }
 0x1ac   : > { %1292 = vst [vmem:[%s2863_s29 + $0x30] sm:$0xff] %v1284_v2  ;;  %v1221_v23 = vmul.f32 0.5, %v1980_v6 }
 0x1ad   : > { %v1982_v15 = vpop.eup %1981  ;;  %v1269_v49 = vadd.f32 %v1261_v33, %v1253_v38 }
 0x1ae   : > { %v1283_v10 = vmul.f32 %v1982_v15, %v1227_v7 }
 0x1af   : > { %1983 = vtanh.f32 %v1269_v49  ;;  %1301 = vst [vmem:[%s2839_s13 + $0x38] sm:$0xff] %v1269_v49 }
 0x1b0   : > { %1291 = vst [vmem:[%s2863_s29 + $0x28] sm:$0xff] %v1283_v10 }
 0x1b1   : > { %2040 = shalt.err (!%p2037_p3)
}
 0x1b2   : > { %s2117_s22 = smov 256   ;;  %s2118_s16 = smov 512   ;;  %v1229_v58 = vadd.f32 0.5, %v1221_v23 }
 0x1b3   : > { %s2119_s26 = smov 16   ;;  %s1320_s10 = sshll.u32 %s2863_s29, 4  ;;  %s1321_s10 = int_to_ptr.vmem [resolvable:$true] %s1320_s10 }
 0x1b4   : > { %1852 = dma.vmem_to_hbm [thread:$0]  (%p2198_p9), %s2900_s8, 1024, %s1340_s9, %s1308_s14, %s2117_s22, %s2118_s16, %s2119_s26  }
 0x1b5   : > { %s1322_s11 = sshll.u32 %s1319_s12, 4  ;;  %v1984_v57 = vpop.eup %1983  ;;  %s1303_s15 = scalar_lea.sflag [#allocation4], %s2238_s28  ;;  %s1323_s11 = int_to_ptr.hbm [resolvable:$true] %s1322_s11 }
 0x1b6   : > { %v1285_v9 = vmul.f32 %v1984_v57, %v1229_v58  ;;  %s2055_s25 = sshra.s32 %s1323_s11, 4  ;;  %s2061_s8 = scalar_lea.hbm %s2959_s4, 128  ;;  %s2056_s25 = int_to_ptr.hbm [resolvable:$true] %s2055_s25 }
 0x1b7   : > { %s2057_s20 = scalar_lea.hbm %s2056_s25, 64  ;;  %p2062_p8 = scmp.lt.s32.totalorder %s2056_s25, %s2959_s4 }
 0x1b8   : > { %1293 = vst [vmem:[%s2863_s29 + $0x38] sm:$0xff] %v1285_v9  ;;  %p2058_p4 = scmp.ne.s32.totalorder %s2056_s25, %s2057_s20  ;;  %p2063_p6 = scmp.lt.s32.totalorder %s2061_s8, %s2057_s20 }
 0x1ba   : > { %p2059_p5 = pnand %p2058_p4, %p2198_p9  ;;  %p2064_p12 = por %p2063_p6, %p2062_p8 }
 0x1bc   : > { %p2060_p7 = pneg %p2059_p5 }
 0x1be   : > { %p2065_p13 = pnand %p2064_p12, %p2060_p7 }
 0x1c0   : > { %2068 = shalt.err (!%p2065_p13)
}
 0x1c1   : > { %1851 = dma.vmem_to_hbm [thread:$0]  (%p2198_p9), %s1321_s10, 1024, %s1323_s11, %s1303_s15, %s2117_s22, %s2118_s16, %s2119_s26  }
 0x1c2 PF: > { %s1354_s28 = sand.u32 1, %s2099_s18   ;;  %p1856_p0 = pnand %p1466_p11, %p2202_p10 }
 0x1c3   : > { %s1355_s29 = scalar_lea.sflag [#allocation4], %s1354_s28 }
 0x1c4   : > { %p1857_p1 = pneg %p1856_p0 }
 0x1c6   : > { %2090 = dma.done.wait (%p1857_p1), %s1355_s29, 1024  }
 0x1c7   : > { %2092 = vsyncadd (%p1857_p1), %s1355_s29, 4294966272  ;;  %s1365_s14 = scalar_lea.sflag [#allocation8], %s1354_s28 }
 0x1c8   : > { %2094 = dma.done.wait (%p1857_p1), %s1365_s14, 1024  }
 0x1c9   : > { %2096 = vsyncadd (%p1857_p1), %s1365_s14, 4294966272  ;;  %s2978_s30 = sld [smem:[#allocation12_spill]]  ;;  %p22_p9 = scmp.ge.s32.totalorder %s2175_s24, 4  }
 0x1ca   : > { %s2979_s20 = sld [smem:[#allocation13_spill]]  ;;  %s2980_s18 = smov %s2103_s19 }
 0x1cb   : > { %s2982_s21 = smov %s2175_s24  ;;  %24 = sbr.rel (!%p22_p9) target bundleno = 7 (0x7), region = 129 }
 0x1cf   : > { %s2981_s19 = smov %s2978_s30 }
 0x1d0   :  { %1371 = vsyncpa [#allocation3], 1 }
 0x1d1   :  { %1373 = vsyncpa [#allocation3 + $0x1], 1 }
 0x1d2   :  { %1374 = vsyncpa [#allocation4], 1 }
 0x1d3   :  { %1376 = vsyncpa [#allocation4 + $0x1], 1 }
 0x1d4   :  { %1377 = vsyncpa [#allocation8], 1 }
 0x1d5   :  { %1379 = vsyncpa [#allocation8 + $0x1], 1 }

</bundles_post_ra>
